<compile_context>
chip_gen: v7x
topology: tpu7x:2x2x1
jax: 0.10.0
libtpu: 0.0.40
codegen_flags: <defaults>
</compile_context>

<pallas_src>
import functools

import jax
import jax.numpy as jnp
from jax.experimental import pallas as pl
from jax.experimental.pallas import tpu as pltpu


LANE = 128


def _round_up(n, m=LANE):
    return ((n + m - 1) // m) * m


# ---------------------------------------------------------------------------
# Fused decoder-step kernel
# ---------------------------------------------------------------------------

def _make_decoder_kernel(n_layers, h_pad):
    """Build the fused kernel body for a given (static) layer count / padded H."""

    def kernel(*refs):
        ids_ref, emb_ref, h_ref, c_ref = refs[:4]
        layer_refs = refs[4:4 + 3 * n_layers]            # wx_0, wh_0, b_0, ...
        fc_w_ref, fc_b_ref = refs[4 + 3 * n_layers: 6 + 3 * n_layers]
        pred_ref, h_out_ref, c_out_ref = refs[6 + 3 * n_layers:]

        B = ids_ref.shape[0]
        V_pad = emb_ref.shape[0]                          # multiple of 128

        # --- Embedding gather fused as a one-hot matmul (MXU) ----------------
        ids = ids_ref[...]                                # [B, 1] int32
        vocab_iota = jax.lax.broadcasted_iota(jnp.int32, (B, V_pad), 1)
        one_hot = (vocab_iota == ids).astype(jnp.float32)  # [B, V_pad] full vregs
        x = jnp.dot(one_hot, emb_ref[...],
                    preferred_element_type=jnp.float32)   # [B, E_pad]
        # dropout(embedded): eval-mode identity.

        for l in range(n_layers):
            wx_ref = layer_refs[3 * l]         # [in_pad, 4*H_pad]
            wh_ref = layer_refs[3 * l + 1]     # [H_pad, 4*H_pad]
            b_ref = layer_refs[3 * l + 2]      # [1, 4*H_pad]
            h = h_ref[l]                       # [B, H_pad]
            c = c_ref[l]                       # [B, H_pad]

            # Two MXU dots (same MXU work as one fused dot, no concat copy).
            gates = (jnp.dot(x, wx_ref[...], preferred_element_type=jnp.float32)
                     + jnp.dot(h, wh_ref[...], preferred_element_type=jnp.float32)
                     + b_ref[...])                        # [B, 4*H_pad]

            # 128-lane-aligned gate slices (H_pad is a multiple of 128) --
            # each slice is whole vregs, so per-gate EUP ops are lane-dense.
            i_g = jax.nn.sigmoid(gates[:, 0 * h_pad:1 * h_pad])
            f_g = jax.nn.sigmoid(gates[:, 1 * h_pad:2 * h_pad])
            g_g = jnp.tanh(gates[:, 2 * h_pad:3 * h_pad])
            o_g = jax.nn.sigmoid(gates[:, 3 * h_pad:4 * h_pad])

            c_new = f_g * c + i_g * g_g
            h_new = o_g * jnp.tanh(c_new)

            h_out_ref[l] = h_new
            c_out_ref[l] = c_new
            x = h_new                           # inter-layer dropout: identity

        pred_ref[...] = (jnp.dot(x, fc_w_ref[...],
                                 preferred_element_type=jnp.float32)
                         + fc_b_ref[...])

    return kernel


# ---------------------------------------------------------------------------
# Wrapper: one fused pallas_call per decode step
# ---------------------------------------------------------------------------

@functools.partial(jax.jit, static_argnames=("output_dim",))
def decoder_forward(packed, input_ids, hidden, cell, *, output_dim):
    """hidden/cell: [n_layers, B, H] (unpadded). Returns PyTorch-shaped outputs."""
    L, B, H = hidden.shape
    V_pad, E_pad = packed["embedding"].shape
    H_pad, O_pad = packed["fc_w"].shape

    # Lane-pad state (zeros in pad lanes stay zero through the recurrence).
    h_pad = jnp.zeros((L, B, H_pad), jnp.float32).at[:, :, :H].set(hidden)
    c_pad = jnp.zeros((L, B, H_pad), jnp.float32).at[:, :, :H].set(cell)
    ids2d = input_ids.reshape(B, 1).astype(jnp.int32)

    operands = [ids2d, packed["embedding"], h_pad, c_pad]
    for l in range(L):
        operands += [packed[f"w_x_{l}"], packed[f"w_h_{l}"], packed[f"b_{l}"]]
    operands += [packed["fc_w"], packed["fc_b"]]

    vmem = pltpu.MemorySpace.VMEM
    in_specs = [pl.BlockSpec(memory_space=vmem) for _ in operands]
    out_specs = (pl.BlockSpec(memory_space=vmem),
                 pl.BlockSpec(memory_space=vmem),
                 pl.BlockSpec(memory_space=vmem))
    out_shape = (
        jax.ShapeDtypeStruct((B, O_pad), jnp.float32),
        jax.ShapeDtypeStruct((L, B, H_pad), jnp.float32),
        jax.ShapeDtypeStruct((L, B, H_pad), jnp.float32),
    )

    # Advisory cost estimate for the XLA scheduler.
    flops = 2 * B * V_pad * E_pad + 2 * B * H_pad * O_pad
    for l in range(L):
        in_pad = packed[f"w_x_{l}"].shape[0]
        flops += 2 * B * (in_pad + H_pad) * (4 * H_pad)
    transcendentals = L * B * 6 * H_pad          # 3 sigmoid + 3 tanh blocks
    bytes_accessed = sum(int(op.size) * op.dtype.itemsize for op in operands)
    bytes_accessed += (B * O_pad + 2 * L * B * H_pad) * 4

    pred_pad, h_out_pad, c_out_pad = pl.pallas_call(
        _make_decoder_kernel(L, H_pad),
        out_shape=out_shape,
        in_specs=in_specs,
        out_specs=out_specs,
        # Update the state buffers in place: hidden -> hidden_out, cell -> cell_out.
        input_output_aliases={2: 1, 3: 2},
        cost_estimate=pl.CostEstimate(
            flops=flops,
            transcendentals=transcendentals,
            bytes_accessed=bytes_accessed),
    )(*operands)

    prediction = pred_pad[:, :output_dim]
    hidden_out = h_out_pad[:, :, :H]
    cell_out = c_out_pad[:, :, :H]
    return prediction, hidden_out, cell_out


# ---------------------------------------------------------------------------
# Parameters: PyTorch-layout raw params + packing into padded/transposed layout
# ---------------------------------------------------------------------------

def init_raw_params(key, output_dim, emb_dim, hidden_dim, n_layers):
    """PyTorch-shaped parameters (weight_ih [4H,in], weight_hh [4H,H], ...)."""
    keys = jax.random.split(key, 3 + 4 * n_layers)
    k_it = iter(keys)
    raw = {}
    raw["embedding"] = jax.random.normal(next(k_it), (output_dim, emb_dim),
                                         dtype=jnp.float32)
    bound = 1.0 / float(hidden_dim) ** 0.5
    for l in range(n_layers):
        in_dim = emb_dim if l == 0 else hidden_dim
        raw[f"w_ih_{l}"] = jax.random.uniform(next(k_it), (4 * hidden_dim, in_dim),
                                              minval=-bound, maxval=bound,
                                              dtype=jnp.float32)
        raw[f"w_hh_{l}"] = jax.random.uniform(next(k_it), (4 * hidden_dim, hidden_dim),
                                              minval=-bound, maxval=bound,
                                              dtype=jnp.float32)
        raw[f"b_ih_{l}"] = jax.random.uniform(next(k_it), (4 * hidden_dim,),
                                              minval=-bound, maxval=bound,
                                              dtype=jnp.float32)
        raw[f"b_hh_{l}"] = jax.random.uniform(next(k_it), (4 * hidden_dim,),
                                              minval=-bound, maxval=bound,
                                              dtype=jnp.float32)
    raw["fc_w"] = jax.random.uniform(next(k_it), (output_dim, hidden_dim),
                                     minval=-bound, maxval=bound, dtype=jnp.float32)
    raw["fc_b"] = jax.random.uniform(next(k_it), (output_dim,),
                                     minval=-bound, maxval=bound, dtype=jnp.float32)
    return raw


def pack_params(raw, emb_dim, hidden_dim, output_dim, n_layers):
    """Transpose for x@W, fuse biases, zero-pad every feature dim to 128 lanes."""
    E_pad = _round_up(emb_dim)
    H_pad = _round_up(hidden_dim)
    O_pad = _round_up(output_dim)
    H = hidden_dim
    packed = {}

    V = raw["embedding"].shape[0]
    V_pad = _round_up(V)   # vocab padded so the in-kernel one-hot is full vregs
    packed["embedding"] = (jnp.zeros((V_pad, E_pad), jnp.float32)
                           .at[:V, :emb_dim].set(raw["embedding"]))

    for l in range(n_layers):
        in_dim = emb_dim if l == 0 else hidden_dim
        in_pad = E_pad if l == 0 else H_pad
        w_ih = raw[f"w_ih_{l}"]                       # [4H, in_dim]
        w_hh = raw[f"w_hh_{l}"]                       # [4H, H]
        b = raw[f"b_ih_{l}"] + raw[f"b_hh_{l}"]       # [4H]
        w_x = jnp.zeros((in_pad, 4 * H_pad), jnp.float32)
        w_h = jnp.zeros((H_pad, 4 * H_pad), jnp.float32)
        b_cat = jnp.zeros((1, 4 * H_pad), jnp.float32)
        for k in range(4):                             # gate order i, f, g, o
            w_x = w_x.at[:in_dim, k * H_pad:k * H_pad + H].set(
                w_ih[k * H:(k + 1) * H, :].T)
            w_h = w_h.at[:H, k * H_pad:k * H_pad + H].set(
                w_hh[k * H:(k + 1) * H, :].T)
            b_cat = b_cat.at[0, k * H_pad:k * H_pad + H].set(b[k * H:(k + 1) * H])
        packed[f"w_x_{l}"] = w_x
        packed[f"w_h_{l}"] = w_h
        packed[f"b_{l}"] = b_cat

    packed["fc_w"] = (jnp.zeros((H_pad, O_pad), jnp.float32)
                      .at[:hidden_dim, :output_dim].set(raw["fc_w"].T))
    packed["fc_b"] = (jnp.zeros((1, O_pad), jnp.float32)
                      .at[0, :output_dim].set(raw["fc_b"]))
    return packed


# ---------------------------------------------------------------------------
# Pure-JAX reference (mirrors the PyTorch module) for correctness checking
# ---------------------------------------------------------------------------

def decoder_forward_reference(raw, input_ids, hidden, cell, n_layers, hidden_dim):
    H = hidden_dim
    x = raw["embedding"][input_ids]                   # [B, E]
    new_h, new_c = [], []
    for l in range(n_layers):
        gates = (x @ raw[f"w_ih_{l}"].T + hidden[l] @ raw[f"w_hh_{l}"].T
                 + raw[f"b_ih_{l}"] + raw[f"b_hh_{l}"])
        i_g = jax.nn.sigmoid(gates[:, 0 * H:1 * H])
        f_g = jax.nn.sigmoid(gates[:, 1 * H:2 * H])
        g_g = jnp.tanh(gates[:, 2 * H:3 * H])
        o_g = jax.nn.sigmoid(gates[:, 3 * H:4 * H])
        c_new = f_g * cell[l] + i_g * g_g
        h_new = o_g * jnp.tanh(c_new)
        new_h.append(h_new)
        new_c.append(c_new)
        x = h_new
    pred = x @ raw["fc_w"].T + raw["fc_b"]
    return pred, jnp.stack(new_h, 0), jnp.stack(new_c, 0)


# ---------------------------------------------------------------------------

if __name__ == "__main__":
    batch = 2               # B=2 accepted as-is (2/8 sublanes used; compute is tiny)
    output_dim = 48
    emb_dim = 32
    hidden_dim = 32
    n_layers = 2
    # dropout = 0.1 -> eval mode, identity.

    key = jax.random.PRNGKey(0)
    k_params, k_ids, k_h, k_c = jax.random.split(key, 4)

    raw = init_raw_params(k_params, output_dim, emb_dim, hidden_dim, n_layers)
    packed = pack_params(raw, emb_dim, hidden_dim, output_dim, n_layers)

    input_ids = jax.random.randint(k_ids, (batch,), 0, output_dim, dtype=jnp.int32)
    hidden = jax.random.normal(k_h, (n_layers, batch, hidden_dim), dtype=jnp.float32)
    cell = jax.random.normal(k_c, (n_layers, batch, hidden_dim), dtype=jnp.float32)

    prediction, hidden_out, cell_out = decoder_forward(
        packed, input_ids, hidden, cell, output_dim=output_dim)
    jax.block_until_ready((prediction, hidden_out, cell_out))

    assert prediction.shape == (batch, output_dim)
    assert hidden_out.shape == (n_layers, batch, hidden_dim)
    assert cell_out.shape == (n_layers, batch, hidden_dim)

    # Numerical check against the pure-JAX reference of the PyTorch module.
    pred_ref, h_ref, c_ref = decoder_forward_reference(
        raw, input_ids, hidden, cell, n_layers, hidden_dim)
    assert jnp.allclose(prediction, pred_ref, atol=1e-4, rtol=1e-4)
    assert jnp.allclose(hidden_out, h_ref, atol=1e-4, rtol=1e-4)
    assert jnp.allclose(cell_out, c_ref, atol=1e-4, rtol=1e-4)

    print("KERNEL_OK")
</pallas_src>

<mosaic_0001>
module attributes {stable_mosaic.version = 11 : i64} {
  func.func @kernel(%arg0: memref<2x1xi32, #tpu.memory_space<vmem>>, %arg1: memref<128x128xf32, #tpu.memory_space<vmem>>, %arg2: memref<2x2x128xf32, #tpu.memory_space<vmem>>, %arg3: memref<2x2x128xf32, #tpu.memory_space<vmem>>, %arg4: memref<128x512xf32, #tpu.memory_space<vmem>>, %arg5: memref<128x512xf32, #tpu.memory_space<vmem>>, %arg6: memref<1x512xf32, #tpu.memory_space<vmem>>, %arg7: memref<128x512xf32, #tpu.memory_space<vmem>>, %arg8: memref<128x512xf32, #tpu.memory_space<vmem>>, %arg9: memref<1x512xf32, #tpu.memory_space<vmem>>, %arg10: memref<128x128xf32, #tpu.memory_space<vmem>>, %arg11: memref<1x128xf32, #tpu.memory_space<vmem>>, %arg12: memref<2x128xf32, #tpu.memory_space<vmem>>, %arg13: memref<2x2x128xf32, #tpu.memory_space<vmem>>, %arg14: memref<2x2x128xf32, #tpu.memory_space<vmem>>) attributes {dimension_semantics = [], scalar_prefetch = 0 : i64, scratch_operands = 0 : i64, tpu.core_type = #tpu.core_type<tc>} {
    %c0 = arith.constant 0 : index
    %c0_0 = arith.constant 0 : index
    %0 = vector.load %arg0[%c0, %c0_0] : memref<2x1xi32, #tpu.memory_space<vmem>>, vector<2x1xi32>
    %1 = tpu.iota {dimensions = array<i32: 1>} : vector<2x128xi32>
    %2 = vector.broadcast %0 : vector<2x1xi32> to vector<2x128xi32>
    %3 = arith.cmpi eq, %1, %2 : vector<2x128xi32>
    %4 = arith.extui %3 : vector<2x128xi1> to vector<2x128xi32>
    %5 = arith.sitofp %4 : vector<2x128xi32> to vector<2x128xf32>
    %c0_1 = arith.constant 0 : index
    %c0_2 = arith.constant 0 : index
    %6 = vector.load %arg1[%c0_1, %c0_2] : memref<128x128xf32, #tpu.memory_space<vmem>>, vector<128x128xf32>
    %cst = arith.constant dense<0.000000e+00> : vector<2x128xf32>
    %7 = tpu.matmul %5, %6, %cst {dimension_numbers = #tpu.dot_dimension_numbers<[1], [0], [0], [1], [0, 0, 1, 1], [], []>} : vector<2x128xf32>, vector<128x128xf32>, vector<2x128xf32> -> vector<2x128xf32>
    %c0_3 = arith.constant 0 : index
    %c0_4 = arith.constant 0 : index
    %c0_5 = arith.constant 0 : index
    %8 = vector.load %arg2[%c0_3, %c0_4, %c0_5] : memref<2x2x128xf32, #tpu.memory_space<vmem>>, vector<1x2x128xf32>
    %9 = vector.shape_cast %8 : vector<1x2x128xf32> to vector<2x128xf32>
    %c0_6 = arith.constant 0 : index
    %c0_7 = arith.constant 0 : index
    %c0_8 = arith.constant 0 : index
    %10 = vector.load %arg3[%c0_6, %c0_7, %c0_8] : memref<2x2x128xf32, #tpu.memory_space<vmem>>, vector<1x2x128xf32>
    %11 = vector.shape_cast %10 : vector<1x2x128xf32> to vector<2x128xf32>
    %c0_9 = arith.constant 0 : index
    %c0_10 = arith.constant 0 : index
    %12 = vector.load %arg4[%c0_9, %c0_10] : memref<128x512xf32, #tpu.memory_space<vmem>>, vector<128x512xf32>
    %cst_11 = arith.constant dense<0.000000e+00> : vector<2x512xf32>
    %13 = tpu.matmul %7, %12, %cst_11 {dimension_numbers = #tpu.dot_dimension_numbers<[1], [0], [0], [1], [0, 0, 1, 1], [], []>} : vector<2x128xf32>, vector<128x512xf32>, vector<2x512xf32> -> vector<2x512xf32>
    %c0_12 = arith.constant 0 : index
    %c0_13 = arith.constant 0 : index
    %14 = vector.load %arg5[%c0_12, %c0_13] : memref<128x512xf32, #tpu.memory_space<vmem>>, vector<128x512xf32>
    %cst_14 = arith.constant dense<0.000000e+00> : vector<2x512xf32>
    %15 = tpu.matmul %9, %14, %cst_14 {dimension_numbers = #tpu.dot_dimension_numbers<[1], [0], [0], [1], [0, 0, 1, 1], [], []>} : vector<2x128xf32>, vector<128x512xf32>, vector<2x512xf32> -> vector<2x512xf32>
    %16 = arith.addf %13, %15 : vector<2x512xf32>
    %c0_15 = arith.constant 0 : index
    %c0_16 = arith.constant 0 : index
    %17 = vector.load %arg6[%c0_15, %c0_16] : memref<1x512xf32, #tpu.memory_space<vmem>>, vector<1x512xf32>
    %18 = vector.broadcast %17 : vector<1x512xf32> to vector<2x512xf32>
    %19 = arith.addf %16, %18 : vector<2x512xf32>
    %20 = vector.extract_strided_slice %19 {offsets = [0, 0], sizes = [2, 128], strides = [1, 1]} : vector<2x512xf32> to vector<2x128xf32>
    %21 = arith.negf %20 : vector<2x128xf32>
    %22 = math.exp %21 : vector<2x128xf32>
    %cst_17 = arith.constant 1.000000e+00 : f32
    %23 = vector.broadcast %cst_17 : f32 to vector<2x128xf32>
    %24 = arith.addf %23, %22 : vector<2x128xf32>
    %25 = arith.divf %23, %24 : vector<2x128xf32>
    %26 = vector.extract_strided_slice %19 {offsets = [0, 128], sizes = [2, 128], strides = [1, 1]} : vector<2x512xf32> to vector<2x128xf32>
    %27 = arith.negf %26 : vector<2x128xf32>
    %28 = math.exp %27 : vector<2x128xf32>
    %cst_18 = arith.constant 1.000000e+00 : f32
    %29 = vector.broadcast %cst_18 : f32 to vector<2x128xf32>
    %30 = arith.addf %29, %28 : vector<2x128xf32>
    %31 = arith.divf %29, %30 : vector<2x128xf32>
    %32 = vector.extract_strided_slice %19 {offsets = [0, 256], sizes = [2, 128], strides = [1, 1]} : vector<2x512xf32> to vector<2x128xf32>
    %33 = math.tanh %32 : vector<2x128xf32>
    %34 = vector.extract_strided_slice %19 {offsets = [0, 384], sizes = [2, 128], strides = [1, 1]} : vector<2x512xf32> to vector<2x128xf32>
    %35 = arith.negf %34 : vector<2x128xf32>
    %36 = math.exp %35 : vector<2x128xf32>
    %cst_19 = arith.constant 1.000000e+00 : f32
    %37 = vector.broadcast %cst_19 : f32 to vector<2x128xf32>
    %38 = arith.addf %37, %36 : vector<2x128xf32>
    %39 = arith.divf %37, %38 : vector<2x128xf32>
    %40 = arith.mulf %31, %11 : vector<2x128xf32>
    %41 = arith.mulf %25, %33 : vector<2x128xf32>
    %42 = arith.addf %40, %41 : vector<2x128xf32>
    %43 = math.tanh %42 : vector<2x128xf32>
    %44 = arith.mulf %39, %43 : vector<2x128xf32>
    %c0_20 = arith.constant 0 : index
    %c0_21 = arith.constant 0 : index
    %c0_22 = arith.constant 0 : index
    %45 = vector.load %arg13[%c0_20, %c0_21, %c0_22] : memref<2x2x128xf32, #tpu.memory_space<vmem>>, vector<1x2x128xf32>
    %46 = vector.shape_cast %45 : vector<1x2x128xf32> to vector<2x128xf32>
    %47 = vector.shape_cast %44 : vector<2x128xf32> to vector<1x2x128xf32>
    tpu.vector_store %arg13[%c0_20, %c0_21, %c0_22], %47 {strides = array<i32>} : memref<2x2x128xf32, #tpu.memory_space<vmem>>, vector<1x2x128xf32>,
    %c0_23 = arith.constant 0 : index
    %c0_24 = arith.constant 0 : index
    %c0_25 = arith.constant 0 : index
    %48 = vector.load %arg14[%c0_23, %c0_24, %c0_25] : memref<2x2x128xf32, #tpu.memory_space<vmem>>, vector<1x2x128xf32>
    %49 = vector.shape_cast %48 : vector<1x2x128xf32> to vector<2x128xf32>
    %50 = vector.shape_cast %42 : vector<2x128xf32> to vector<1x2x128xf32>
    tpu.vector_store %arg14[%c0_23, %c0_24, %c0_25], %50 {strides = array<i32>} : memref<2x2x128xf32, #tpu.memory_space<vmem>>, vector<1x2x128xf32>,
    %c1 = arith.constant 1 : index
    %c0_26 = arith.constant 0 : index
    %c0_27 = arith.constant 0 : index
    %51 = vector.load %arg2[%c1, %c0_26, %c0_27] : memref<2x2x128xf32, #tpu.memory_space<vmem>>, vector<1x2x128xf32>
    %52 = vector.shape_cast %51 : vector<1x2x128xf32> to vector<2x128xf32>
    %c1_28 = arith.constant 1 : index
    %c0_29 = arith.constant 0 : index
    %c0_30 = arith.constant 0 : index
    %53 = vector.load %arg3[%c1_28, %c0_29, %c0_30] : memref<2x2x128xf32, #tpu.memory_space<vmem>>, vector<1x2x128xf32>
    %54 = vector.shape_cast %53 : vector<1x2x128xf32> to vector<2x128xf32>
    %c0_31 = arith.constant 0 : index
    %c0_32 = arith.constant 0 : index
    %55 = vector.load %arg7[%c0_31, %c0_32] : memref<128x512xf32, #tpu.memory_space<vmem>>, vector<128x512xf32>
    %cst_33 = arith.constant dense<0.000000e+00> : vector<2x512xf32>
    %56 = tpu.matmul %44, %55, %cst_33 {dimension_numbers = #tpu.dot_dimension_numbers<[1], [0], [0], [1], [0, 0, 1, 1], [], []>} : vector<2x128xf32>, vector<128x512xf32>, vector<2x512xf32> -> vector<2x512xf32>
    %c0_34 = arith.constant 0 : index
    %c0_35 = arith.constant 0 : index
    %57 = vector.load %arg8[%c0_34, %c0_35] : memref<128x512xf32, #tpu.memory_space<vmem>>, vector<128x512xf32>
    %cst_36 = arith.constant dense<0.000000e+00> : vector<2x512xf32>
    %58 = tpu.matmul %52, %57, %cst_36 {dimension_numbers = #tpu.dot_dimension_numbers<[1], [0], [0], [1], [0, 0, 1, 1], [], []>} : vector<2x128xf32>, vector<128x512xf32>, vector<2x512xf32> -> vector<2x512xf32>
    %59 = arith.addf %56, %58 : vector<2x512xf32>
    %c0_37 = arith.constant 0 : index
    %c0_38 = arith.constant 0 : index
    %60 = vector.load %arg9[%c0_37, %c0_38] : memref<1x512xf32, #tpu.memory_space<vmem>>, vector<1x512xf32>
    %61 = vector.broadcast %60 : vector<1x512xf32> to vector<2x512xf32>
    %62 = arith.addf %59, %61 : vector<2x512xf32>
    %63 = vector.extract_strided_slice %62 {offsets = [0, 0], sizes = [2, 128], strides = [1, 1]} : vector<2x512xf32> to vector<2x128xf32>
    %64 = arith.negf %63 : vector<2x128xf32>
    %65 = math.exp %64 : vector<2x128xf32>
    %cst_39 = arith.constant 1.000000e+00 : f32
    %66 = vector.broadcast %cst_39 : f32 to vector<2x128xf32>
    %67 = arith.addf %66, %65 : vector<2x128xf32>
    %68 = arith.divf %66, %67 : vector<2x128xf32>
    %69 = vector.extract_strided_slice %62 {offsets = [0, 128], sizes = [2, 128], strides = [1, 1]} : vector<2x512xf32> to vector<2x128xf32>
    %70 = arith.negf %69 : vector<2x128xf32>
    %71 = math.exp %70 : vector<2x128xf32>
    %cst_40 = arith.constant 1.000000e+00 : f32
    %72 = vector.broadcast %cst_40 : f32 to vector<2x128xf32>
    %73 = arith.addf %72, %71 : vector<2x128xf32>
    %74 = arith.divf %72, %73 : vector<2x128xf32>
    %75 = vector.extract_strided_slice %62 {offsets = [0, 256], sizes = [2, 128], strides = [1, 1]} : vector<2x512xf32> to vector<2x128xf32>
    %76 = math.tanh %75 : vector<2x128xf32>
    %77 = vector.extract_strided_slice %62 {offsets = [0, 384], sizes = [2, 128], strides = [1, 1]} : vector<2x512xf32> to vector<2x128xf32>
    %78 = arith.negf %77 : vector<2x128xf32>
    %79 = math.exp %78 : vector<2x128xf32>
    %cst_41 = arith.constant 1.000000e+00 : f32
    %80 = vector.broadcast %cst_41 : f32 to vector<2x128xf32>
    %81 = arith.addf %80, %79 : vector<2x128xf32>
    %82 = arith.divf %80, %81 : vector<2x128xf32>
    %83 = arith.mulf %74, %54 : vector<2x128xf32>
    %84 = arith.mulf %68, %76 : vector<2x128xf32>
    %85 = arith.addf %83, %84 : vector<2x128xf32>
    %86 = math.tanh %85 : vector<2x128xf32>
    %87 = arith.mulf %82, %86 : vector<2x128xf32>
    %c1_42 = arith.constant 1 : index
    %c0_43 = arith.constant 0 : index
    %c0_44 = arith.constant 0 : index
    %88 = vector.load %arg13[%c1_42, %c0_43, %c0_44] : memref<2x2x128xf32, #tpu.memory_space<vmem>>, vector<1x2x128xf32>
    %89 = vector.shape_cast %88 : vector<1x2x128xf32> to vector<2x128xf32>
    %90 = vector.shape_cast %87 : vector<2x128xf32> to vector<1x2x128xf32>
    tpu.vector_store %arg13[%c1_42, %c0_43, %c0_44], %90 {strides = array<i32>} : memref<2x2x128xf32, #tpu.memory_space<vmem>>, vector<1x2x128xf32>,
    %c1_45 = arith.constant 1 : index
    %c0_46 = arith.constant 0 : index
    %c0_47 = arith.constant 0 : index
    %91 = vector.load %arg14[%c1_45, %c0_46, %c0_47] : memref<2x2x128xf32, #tpu.memory_space<vmem>>, vector<1x2x128xf32>
    %92 = vector.shape_cast %91 : vector<1x2x128xf32> to vector<2x128xf32>
    %93 = vector.shape_cast %85 : vector<2x128xf32> to vector<1x2x128xf32>
    tpu.vector_store %arg14[%c1_45, %c0_46, %c0_47], %93 {strides = array<i32>} : memref<2x2x128xf32, #tpu.memory_space<vmem>>, vector<1x2x128xf32>,
    %c0_48 = arith.constant 0 : index
    %c0_49 = arith.constant 0 : index
    %94 = vector.load %arg10[%c0_48, %c0_49] : memref<128x128xf32, #tpu.memory_space<vmem>>, vector<128x128xf32>
    %cst_50 = arith.constant dense<0.000000e+00> : vector<2x128xf32>
    %95 = tpu.matmul %87, %94, %cst_50 {dimension_numbers = #tpu.dot_dimension_numbers<[1], [0], [0], [1], [0, 0, 1, 1], [], []>} : vector<2x128xf32>, vector<128x128xf32>, vector<2x128xf32> -> vector<2x128xf32>
    %c0_51 = arith.constant 0 : index
    %c0_52 = arith.constant 0 : index
    %96 = vector.load %arg11[%c0_51, %c0_52] : memref<1x128xf32, #tpu.memory_space<vmem>>, vector<1x128xf32>
    %97 = vector.broadcast %96 : vector<1x128xf32> to vector<2x128xf32>
    %98 = arith.addf %95, %97 : vector<2x128xf32>
    %c0_53 = arith.constant 0 : index
    %c0_54 = arith.constant 0 : index
    %99 = vector.load %arg12[%c0_53, %c0_54] : memref<2x128xf32, #tpu.memory_space<vmem>>, vector<2x128xf32>
    tpu.vector_store %arg12[%c0_53, %c0_54], %98 {strides = array<i32>} : memref<2x128xf32, #tpu.memory_space<vmem>>, vector<2x128xf32>,
    return
  }
}

</mosaic_0001>

<bundles_post_ra>
// kernel: decoder_forward.1
= control target key start
LH: loop header
LB: loop body
LE: loop exit
PB: predicated region body
PF: predicated region fallthrough
CT: control target
= control target key end

     0   :  { %20 = vsyncpa [#allocation3], 0  ;;  %s2205_s0 = inlined_call_operand.vmem [shape: s32[2,1], index: 0, kind: input, shape index: {}]   ;;  %s2206_s1 = inlined_call_operand.hbm [shape: f32[128,128], index: 1, kind: input, shape index: {}]   ;;  %s2207_s2 = inlined_call_operand.vmem [shape: f32[2,2,128], index: 2, kind: input, shape index: {}, may-alias: {2,13}]   ;;  %s2208_s3 = inlined_call_operand.vmem [shape: f32[2,2,128], index: 3, kind: input, shape index: {}, may-alias: {3,14}]   ;;  %s2209_s4 = inlined_call_operand.hbm [shape: f32[128,512], index: 4, kind: input, shape index: {}]   ;;  %s2210_s5 = inlined_call_operand.hbm [shape: f32[128,512], index: 5, kind: input, shape index: {}]   ;;  %s2211_s6 = inlined_call_operand.vmem [shape: f32[1,512], index: 6, kind: input, shape index: {}]   ;;  %s2212_s7 = inlined_call_operand.hbm [shape: f32[128,512], index: 7, kind: input, shape index: {}]   ;;  %s2213_s8 = inlined_call_operand.hbm [shape: f32[128,512], index: 8, kind: input, shape index: {}]   ;;  %s2214_s9 = inlined_call_operand.vmem [shape: f32[1,512], index: 9, kind: input, shape index: {}]   ;;  %s2215_s10 = inlined_call_operand.hbm [shape: f32[128,128], index: 10, kind: input, shape index: {}]   ;;  %s2216_s11 = inlined_call_operand.vmem [shape: f32[1,128], index: 11, kind: input, shape index: {}]   ;;  %s2217_s12 = inlined_call_operand.hbm [shape: f32[2,128], index: 12, kind: output, shape index: {0}]   ;;  %s2218_s13 = inlined_call_operand.vmem [shape: f32[2,2,128], index: 13, kind: output, shape index: {1}, may-alias: {2,13}]   ;;  %s2219_s14 = inlined_call_operand.vmem [shape: f32[2,2,128], index: 14, kind: output, shape index: {2}, may-alias: {3,14}]  }
   0x1   :  { %21 = vsyncpa [#allocation6], 0 }
   0x2   :  { %22 = vsyncpa [#allocation9], 0 }
   0x3   :  { %23 = vsyncpa [#allocation12], 0 }
   0x4   :  { %24 = vsyncpa [#allocation4], 0  ;;  %s1920_s29 = smov [#allocation5]   ;;  %s1756_s17 = scalar_lea.hbm %s2209_s4, 8192 }
   0x5   :  { %s48_s30 = sshll.u32 %s1920_s29, 4  ;;  %p1757_p0 = scmp.ne.s32.totalorder %s2209_s4, %s1756_s17  ;;  %s49_s30 = int_to_ptr.vmem [resolvable:$true] %s48_s30 }
   0x6   :  { %p1760_p1 = scmp.lt.u32.totalorder %s1756_s17, %s2209_s4 }
   0x8   :  { %p1762_p2 = pnand %p1760_p1, %p1757_p0 }
   0xa   :  { %1765 = shalt.err (!%p1762_p2)
}
   0xb   :  { %s1766_s22 = scalar_lea.vmem %s49_s30, 8192  ;;  %p1771_p4 = scmp.lt.s32.totalorder %s49_s30, %s49_s30 }
   0xc   :  { %p1767_p3 = scmp.ne.s32.totalorder %s49_s30, %s1766_s22  ;;  %p1772_p5 = scmp.lt.s32.totalorder %s1766_s22, %s1766_s22 }
   0xe   :  { %p1773_p6 = por %p1772_p5, %p1771_p4 }
  0x10   :  { %p1774_p7 = pnand %p1773_p6, %p1767_p3 }
  0x12   :  { %1777 = shalt.err (!%p1774_p7)
}
  0x13   :  { %s1921_s23 = smov 512   ;;  %s1922_s24 = smov 32  }
  0x14   :  { %54 = dma.hbm_to_vmem [thread:$0]  %s2209_s4, 8192, %s49_s30, [#allocation6], %s1921_s23, %s1921_s23, %s1922_s24  }
  0x15   :  { %s1923_s27 = smov [#allocation8]   ;;  %s1924_s29 = smov [#allocation2]  }
  0x16   :  { %s74_s28 = sshll.u32 %s1923_s27, 4  ;;  %s32_s15 = sshll.u32 %s1924_s29, 4  ;;  %s75_s28 = int_to_ptr.vmem [resolvable:$true] %s74_s28  ;;  %s33_s15 = int_to_ptr.vmem [resolvable:$true] %s32_s15 }
  0x17   :  { %s1778_s18 = scalar_lea.hbm %s2212_s7, 8192 }
  0x18   :  { %p1779_p8 = scmp.ne.s32.totalorder %s2212_s7, %s1778_s18  ;;  %p1782_p9 = scmp.lt.u32.totalorder %s1778_s18, %s2212_s7 }
  0x1a   :  { %p1784_p10 = pnand %p1782_p9, %p1779_p8 }
  0x1c   :  { %1787 = shalt.err (!%p1784_p10)
}
  0x1d   :  { %s1788_s4 = scalar_lea.vmem %s75_s28, 8192  ;;  %p1793_p12 = scmp.lt.s32.totalorder %s75_s28, %s75_s28 }
  0x1e   :  { %p1789_p11 = scmp.ne.s32.totalorder %s75_s28, %s1788_s4  ;;  %p1794_p13 = scmp.lt.s32.totalorder %s1788_s4, %s1788_s4 }
  0x20   :  { %p1795_p0 = por %p1794_p13, %p1793_p12 }
  0x22   :  { %p1796_p1 = pnand %p1795_p0, %p1789_p11 }
  0x24   :  { %1799 = shalt.err (!%p1796_p1)
}
  0x25   :  { %80 = dma.hbm_to_vmem [thread:$0]  %s2212_s7, 8192, %s75_s28, [#allocation9], %s1921_s23, %s1921_s23, %s1922_s24  }
  0x26   :  { %s1800_s29 = scalar_lea.hbm %s2206_s1, 2048 }
  0x27   :  { %p1801_p2 = scmp.ne.s32.totalorder %s2206_s1, %s1800_s29  ;;  %p1804_p3 = scmp.lt.u32.totalorder %s1800_s29, %s2206_s1 }
  0x29   :  { %p1806_p4 = pnand %p1804_p3, %p1801_p2 }
  0x2b   :  { %1809 = shalt.err (!%p1806_p4)
}
  0x2c   :  { %s1810_s20 = scalar_lea.vmem %s33_s15, 2048  ;;  %p1815_p6 = scmp.lt.s32.totalorder %s33_s15, %s33_s15 }
  0x2d   :  { %p1811_p5 = scmp.ne.s32.totalorder %s33_s15, %s1810_s20  ;;  %p1816_p7 = scmp.lt.s32.totalorder %s1810_s20, %s1810_s20 }
  0x2f   :  { %p1817_p8 = por %p1816_p7, %p1815_p6 }
  0x31   :  { %p1818_p9 = pnand %p1817_p8, %p1811_p5 }
  0x33   :  { %1821 = shalt.err (!%p1818_p9)
}
  0x34   :  { %s1925_s7 = smov 128   ;;  %s1926_s28 = smov 8  }
  0x35   :  { %38 = dma.hbm_to_vmem [thread:$0]  %s2206_s1, 2048, %s33_s15, [#allocation3], %s1925_s7, %s1925_s7, %s1926_s28  }
  0x36   :  { %s1927_s4 = smov [#allocation7]   ;;  %s1928_s25 = smov [#allocation10]  }
  0x37   :  { %s60_s30 = sshll.u32 %s1927_s4, 4  ;;  %s86_s26 = sshll.u32 %s1928_s25, 4  ;;  %s61_s30 = int_to_ptr.vmem [resolvable:$true] %s60_s30  ;;  %s87_s26 = int_to_ptr.vmem [resolvable:$true] %s86_s26 }
  0x38   :  { %s1822_s16 = scalar_lea.hbm %s2210_s5, 8192 }
  0x39   :  { %p1823_p10 = scmp.ne.s32.totalorder %s2210_s5, %s1822_s16  ;;  %p1826_p11 = scmp.lt.u32.totalorder %s1822_s16, %s2210_s5 }
  0x3b   :  { %p1828_p12 = pnand %p1826_p11, %p1823_p10 }
  0x3d   :  { %1831 = shalt.err (!%p1828_p12)
}
  0x3e   :  { %s1832_s1 = scalar_lea.vmem %s61_s30, 8192  ;;  %p1837_p0 = scmp.lt.s32.totalorder %s61_s30, %s61_s30 }
  0x3f   :  { %p1833_p13 = scmp.ne.s32.totalorder %s61_s30, %s1832_s1  ;;  %p1838_p1 = scmp.lt.s32.totalorder %s1832_s1, %s1832_s1 }
  0x41   :  { %p1839_p2 = por %p1838_p1, %p1837_p0 }
  0x43   :  { %p1840_p3 = pnand %p1839_p2, %p1833_p13 }
  0x45   :  { %1843 = shalt.err (!%p1840_p3)
}
  0x46   :  { %66 = dma.hbm_to_vmem [thread:$0]  %s2210_s5, 8192, %s61_s30, [#allocation6], %s1921_s23, %s1921_s23, %s1922_s24  }
  0x47   :  { %s1844_s25 = scalar_lea.hbm %s2213_s8, 8192 }
  0x48   :  { %p1845_p4 = scmp.ne.s32.totalorder %s2213_s8, %s1844_s25  ;;  %p1848_p5 = scmp.lt.u32.totalorder %s1844_s25, %s2213_s8 }
  0x4a   :  { %p1850_p6 = pnand %p1848_p5, %p1845_p4 }
  0x4c   :  { %1853 = shalt.err (!%p1850_p6)
}
  0x4d   :  { %s1854_s18 = scalar_lea.vmem %s87_s26, 8192  ;;  %p1859_p8 = scmp.lt.s32.totalorder %s87_s26, %s87_s26 }
  0x4e   :  { %p1855_p7 = scmp.ne.s32.totalorder %s87_s26, %s1854_s18  ;;  %p1860_p9 = scmp.lt.s32.totalorder %s1854_s18, %s1854_s18 }
  0x50   :  { %p1861_p10 = por %p1860_p9, %p1859_p8 }
  0x52   :  { %p1862_p11 = pnand %p1861_p10, %p1855_p7 }
  0x54   :  { %1865 = shalt.err (!%p1862_p11)
}
  0x55   :  { %92 = dma.hbm_to_vmem [thread:$0]  %s2213_s8, 8192, %s87_s26, [#allocation9], %s1921_s23, %s1921_s23, %s1922_s24  }
  0x56   :  { %s1929_s19 = smov [#allocation11]   ;;  %s1866_s21 = scalar_lea.hbm %s2215_s10, 2048 }
  0x57   :  { %s100_s20 = sshll.u32 %s1929_s19, 4  ;;  %p1867_p12 = scmp.ne.s32.totalorder %s2215_s10, %s1866_s21  ;;  %s101_s20 = int_to_ptr.vmem [resolvable:$true] %s100_s20 }
  0x58   :  { %p1870_p13 = scmp.lt.u32.totalorder %s1866_s21, %s2215_s10 }
  0x5a   :  { %p1872_p0 = pnand %p1870_p13, %p1867_p12 }
  0x5c   :  { %1875 = shalt.err (!%p1872_p0)
}
  0x5d   :  { %s1876_s29 = scalar_lea.vmem %s101_s20, 2048  ;;  %p1881_p2 = scmp.lt.s32.totalorder %s101_s20, %s101_s20 }
  0x5e   :  { %p1877_p1 = scmp.ne.s32.totalorder %s101_s20, %s1876_s29  ;;  %p1882_p3 = scmp.lt.s32.totalorder %s1876_s29, %s1876_s29 }
  0x60   :  { %p1883_p4 = por %p1882_p3, %p1881_p2 }
  0x62   :  { %p1884_p5 = pnand %p1883_p4, %p1877_p1 }
  0x64   :  { %1887 = shalt.err (!%p1884_p5)
}
  0x65   :  { %106 = dma.hbm_to_vmem [thread:$0]  %s2215_s10, 2048, %s101_s20, [#allocation12], %s1925_s7, %s1925_s7, %s1926_s28  }
  0x66   :  { %1910 = dma.done.wait [#allocation3], 2048  }
  0x67   :  { %1911 = vsyncadd [#allocation3], 4294965248 }
  0x68   :  { %1912 = dma.done.wait [#allocation6], 16384  }
  0x69   :  { %1913 = vsyncadd [#allocation6], 4294950912 }
  0x6a   :  { %1914 = dma.done.wait [#allocation9], 16384  }
  0x6b   :  { %1915 = vsyncadd [#allocation9], 4294950912 }
  0x6c   :  { %1916 = dma.done.wait [#allocation12], 2048  }
  0x6d   :  { %1917 = vsyncadd [#allocation12], 4294965248  ;;  %v1930_v0 = vmov 0   ;;  %v1931_v1 = vmov 0.0|0.0   ;;  %v127_v2 = vld [vmem:[%s2205_s0] sm:$0x3] }
  0x6e   :  { %1723 = vset.pattern.permute.xlu0 %v1930_v0  ;;  %1395 = vmatprep.subr.bf16.mxu0 %v1931_v1  ;;  %v136_v3 = vld [vmem:[#allocation2] sm:$0xff]  ;;  %v137_v4 = vld [vmem:[#allocation2 + $0x8] sm:$0xff]  ;;  %v138_v6 = vld [vmem:[#allocation2 + $0x10] sm:$0xff]  ;;  %vm1932_vm0 = vmmov 0   ;;  %v1933_v8 = vmov 0.0   ;;  %s1935_s29 = smov [#allocation13]  }
  0x6f   :  { %131 = vperm.xlu0 %1723, %v127_v2   ;;  %v1396_v5 = vpack.c.bf16 %v137_v4, %v136_v3  ;;  %v139_v7 = vld [vmem:[#allocation2 + $0x18] sm:$0xff]  ;;  %1357 = vmatprep.mubr.msk.f32.mxu0 %vm1932_vm0, %v1933_v8  ;;  %v140_v10 = vld [vmem:[#allocation2 + $0x20] sm:$0xff]  ;;  %v141_v11 = vld [vmem:[#allocation2 + $0x28] sm:$0xff]  ;;  %s1258_s8 = sshll.u32 %s1935_s29, 4  ;;  %s1259_s8 = int_to_ptr.vmem [resolvable:$true] %s1258_s8 }
  0x70   :  { %416 = vmatprep.mubr.f32.mxu1 %v1933_v8  ;;  %v1399_v9 = vpack.c.bf16 %v139_v7, %v138_v6  ;;  %v289_v12 = vld [vmem:[#allocation7 + $0x8] sm:$0xff]  ;;  %v1402_v14 = vpack.c.bf16 %v141_v11, %v140_v10  ;;  %v142_v15 = vld [vmem:[#allocation2 + $0x30] sm:$0xff]  ;;  %v288_v17 = vld [vmem:[#allocation7] sm:$0xff]  ;;  %p1893_p7 = scmp.lt.s32.totalorder %s1259_s8, %s1259_s8 }
  0x71   :  { %1397 = vmatpush3.bf16.msra.mxu0 %v1396_v5  ;;  %v293_v13 = vld [vmem:[#allocation7 + $0x28] sm:$0xff]  ;;  %v292_v18 = vld [vmem:[#allocation7 + $0x20] sm:$0xff]  ;;  %v143_v19 = vld [vmem:[#allocation2 + $0x38] sm:$0xff] }
  0x72   :  { %1398 = vmatprep.subr.bf16.mxu0 %v1931_v1  ;;  %v1419_v16 = vpack.c.bf16 %v293_v13, %v289_v12  ;;  %v1421_v20 = vpack.c.bf16 %v292_v18, %v288_v17  ;;  %v297_v21 = vld [vmem:[#allocation7 + $0x48] sm:$0xff]  ;;  %v296_v24 = vld [vmem:[#allocation7 + $0x40] sm:$0xff]  ;;  %v1405_v26 = vpack.c.bf16 %v143_v19, %v142_v15  ;;  %v146_v39 = vld [vmem:[#allocation2 + $0x50] sm:$0xff] }
  0x73   :  { %v301_v22 = vld [vmem:[#allocation7 + $0x68] sm:$0xff]  ;;  %v300_v25 = vld [vmem:[#allocation7 + $0x60] sm:$0xff]  ;;  %v147_v43 = vld [vmem:[#allocation2 + $0x58] sm:$0xff] }
  0x74   :  { %1420 = vmatprep.subr.bf16.mxu1 %v1419_v16  ;;  %v1423_v23 = vpack.c.bf16 %v301_v22, %v297_v21  ;;  %v144_v27 = vld [vmem:[#allocation2 + $0x40] sm:$0xff]  ;;  %v1425_v28 = vpack.c.bf16 %v300_v25, %v296_v24  ;;  %v305_v29 = vld [vmem:[#allocation7 + $0x88] sm:$0xff]  ;;  %v1411_v47 = vpack.c.bf16 %v147_v43, %v146_v39  ;;  %v150_v57 = vld [vmem:[#allocation2 + $0x70] sm:$0xff] }
  0x75   :  { %1400 = vmatpush3.bf16.msra.mxu0 %v1399_v9  ;;  %1422 = vmatpush1.bf16.msra.mxu1 %v1421_v20  ;;  %v309_v30 = vld [vmem:[#allocation7 + $0xa8] sm:$0xff]  ;;  %v304_v33 = vld [vmem:[#allocation7 + $0x80] sm:$0xff]  ;;  %v151_v61 = vld [vmem:[#allocation2 + $0x78] sm:$0xff] }
  0x76   :  { %1401 = vmatprep.subr.bf16.mxu0 %v1931_v1  ;;  %1424 = vmatprep.subr.bf16.mxu1 %v1423_v23  ;;  %v145_v31 = vld [vmem:[#allocation2 + $0x48] sm:$0xff]  ;;  %v1427_v32 = vpack.c.bf16 %v309_v30, %v305_v29  ;;  %v308_v34 = vld [vmem:[#allocation7 + $0xa0] sm:$0xff]  ;;  %v291_v0 = vld [vmem:[#allocation7 + $0x18] sm:$0xff]  ;;  %v1417_v4 = vpack.c.bf16 %v151_v61, %v150_v57 }
  0x77   :  { %v313_v35 = vld [vmem:[#allocation7 + $0xc8] sm:$0xff]  ;;  %v1429_v36 = vpack.c.bf16 %v308_v34, %v304_v33  ;;  %v1408_v38 = vpack.c.bf16 %v145_v31, %v144_v27  ;;  %v312_v41 = vld [vmem:[#allocation7 + $0xc0] sm:$0xff]  ;;  %v295_v2 = vld [vmem:[#allocation7 + $0x38] sm:$0xff] }
  0x78   :  { %v317_v37 = vld [vmem:[#allocation7 + $0xe8] sm:$0xff]  ;;  %v316_v42 = vld [vmem:[#allocation7 + $0xe0] sm:$0xff]  ;;  %v1451_v9 = vpack.c.bf16 %v295_v2, %v291_v0 }
  0x79   :  { %1403 = vmatpush3.bf16.msra.mxu0 %v1402_v14  ;;  %1426 = vmatpush1.bf16.msra.mxu1 %v1425_v28  ;;  %v1431_v40 = vpack.c.bf16 %v317_v37, %v313_v35  ;;  %v321_v44 = vld [vmem:[#allocation7 + $0x108] sm:$0xff]  ;;  %v1433_v46 = vpack.c.bf16 %v316_v42, %v312_v41  ;;  %v148_v48 = vld [vmem:[#allocation2 + $0x60] sm:$0xff] }
  0x7a   :  { %1404 = vmatprep.subr.bf16.mxu0 %v1931_v1  ;;  %1428 = vmatprep.subr.bf16.mxu1 %v1427_v32  ;;  %v325_v45 = vld [vmem:[#allocation7 + $0x128] sm:$0xff]  ;;  %v320_v50 = vld [vmem:[#allocation7 + $0x100] sm:$0xff] }
  0x7b   :  { %v1435_v49 = vpack.c.bf16 %v325_v45, %v321_v44  ;;  %v324_v51 = vld [vmem:[#allocation7 + $0x120] sm:$0xff]  ;;  %v149_v52 = vld [vmem:[#allocation2 + $0x68] sm:$0xff] }
  0x7c   :  { %v329_v53 = vld [vmem:[#allocation7 + $0x148] sm:$0xff]  ;;  %v1437_v55 = vpack.c.bf16 %v324_v51, %v320_v50  ;;  %v1414_v56 = vpack.c.bf16 %v149_v52, %v148_v48  ;;  %v328_v59 = vld [vmem:[#allocation7 + $0x140] sm:$0xff] }
  0x7d   :  { %1406 = vmatpush3.bf16.msra.mxu0 %v1405_v26  ;;  %1430 = vmatpush1.bf16.msra.mxu1 %v1429_v36  ;;  %v333_v54 = vld [vmem:[#allocation7 + $0x168] sm:$0xff]  ;;  %v332_v60 = vld [vmem:[#allocation7 + $0x160] sm:$0xff] }
  0x7e   :  { %1407 = vmatprep.subr.bf16.mxu0 %v1931_v1  ;;  %1432 = vmatprep.subr.bf16.mxu1 %v1431_v40  ;;  %v1439_v58 = vpack.c.bf16 %v333_v54, %v329_v53  ;;  %v337_v62 = vld [vmem:[#allocation7 + $0x188] sm:$0xff]  ;;  %v1441_v3 = vpack.c.bf16 %v332_v60, %v328_v59  ;;  %v336_v6 = vld [vmem:[#allocation7 + $0x180] sm:$0xff] }
  0x7f   :  { %v341_v63 = vld [vmem:[#allocation7 + $0x1a8] sm:$0xff]  ;;  %v340_v7 = vld [vmem:[#allocation7 + $0x1a0] sm:$0xff] }
  0x80   :  { %v1443_v5 = vpack.c.bf16 %v341_v63, %v337_v62  ;;  %v345_v10 = vld [vmem:[#allocation7 + $0x1c8] sm:$0xff]  ;;  %v1445_v12 = vpack.c.bf16 %v340_v7, %v336_v6  ;;  %v344_v14 = vld [vmem:[#allocation7 + $0x1c0] sm:$0xff]  ;;  %v299_v7 = vld [vmem:[#allocation7 + $0x58] sm:$0xff] }
  0x81   :  { %1409 = vmatpush3.bf16.msra.mxu0 %v1408_v38  ;;  %1434 = vmatpush1.bf16.msra.mxu1 %v1433_v46  ;;  %v349_v11 = vld [vmem:[#allocation7 + $0x1e8] sm:$0xff]  ;;  %v348_v15 = vld [vmem:[#allocation7 + $0x1e0] sm:$0xff] }
  0x82   :  { %1410 = vmatprep.subr.bf16.mxu0 %v1931_v1  ;;  %1436 = vmatprep.subr.bf16.mxu1 %v1435_v49  ;;  %v1447_v13 = vpack.c.bf16 %v349_v11, %v345_v10  ;;  %v225_v16 = vld [vmem:[#allocation5 + $0x8] sm:$0xff]  ;;  %v1449_v18 = vpack.c.bf16 %v348_v15, %v344_v14  ;;  %v224_v20 = vld [vmem:[#allocation5] sm:$0xff]  ;;  %v302_v14 = vld [vmem:[#allocation7 + $0x70] sm:$0xff] }
  0x83   :  { %v229_v17 = vld [vmem:[#allocation5 + $0x28] sm:$0xff]  ;;  %v228_v21 = vld [vmem:[#allocation5 + $0x20] sm:$0xff]  ;;  %v307_v15 = vld [vmem:[#allocation7 + $0x98] sm:$0xff] }
  0x84   :  { %v1483_v19 = vpack.c.bf16 %v229_v17, %v225_v16  ;;  %v233_v22 = vld [vmem:[#allocation5 + $0x48] sm:$0xff]  ;;  %v2118_v24 = vld [vmem:[%s2207_s2] sm:$0x3]  ;;  %v1485_v25 = vpack.c.bf16 %v228_v21, %v224_v20  ;;  %v311_v16 = vld [vmem:[#allocation7 + $0xb8] sm:$0xff]  ;;  %v1934_v17 = vmov 1.0  }
  0x85   :  { %1412 = vmatpush3.bf16.msra.mxu0 %v1411_v47  ;;  %1438 = vmatpush1.bf16.msra.mxu1 %v1437_v55  ;;  %v237_v23 = vld [vmem:[#allocation5 + $0x68] sm:$0xff]  ;;  %v232_v27 = vld [vmem:[#allocation5 + $0x40] sm:$0xff]  ;;  %v306_v20 = vld [vmem:[#allocation7 + $0x90] sm:$0xff] }
  0x86   :  { %1413 = vmatprep.subr.bf16.mxu0 %v1931_v1  ;;  %1440 = vmatprep.subr.bf16.mxu1 %v1439_v58  ;;  %v1487_v26 = vpack.c.bf16 %v237_v23, %v233_v22  ;;  %v236_v28 = vld [vmem:[#allocation5 + $0x60] sm:$0xff]  ;;  %v241_v29 = vld [vmem:[#allocation5 + $0x88] sm:$0xff]  ;;  %v310_v21 = vld [vmem:[#allocation7 + $0xb0] sm:$0xff] }
  0x87   :  { %v245_v30 = vld [vmem:[#allocation5 + $0xa8] sm:$0xff]  ;;  %v1489_v31 = vpack.c.bf16 %v236_v28, %v232_v27  ;;  %v240_v33 = vld [vmem:[#allocation5 + $0x80] sm:$0xff]  ;;  %v315_v22 = vld [vmem:[#allocation7 + $0xd8] sm:$0xff] }
  0x88   :  { %v1491_v32 = vpack.c.bf16 %v245_v30, %v241_v29  ;;  %v244_v34 = vld [vmem:[#allocation5 + $0xa0] sm:$0xff]  ;;  %v249_v35 = vld [vmem:[#allocation5 + $0xc8] sm:$0xff]  ;;  %v319_v23 = vld [vmem:[#allocation7 + $0xf8] sm:$0xff] }
  0x89   :  { %1415 = vmatpush3.bf16.msra.mxu0 %v1414_v56  ;;  %1442 = vmatpush1.bf16.msra.mxu1 %v1441_v3  ;;  %v253_v36 = vld [vmem:[#allocation5 + $0xe8] sm:$0xff]  ;;  %v1493_v37 = vpack.c.bf16 %v244_v34, %v240_v33  ;;  %v248_v39 = vld [vmem:[#allocation5 + $0xc0] sm:$0xff]  ;;  %v128_v3 = vlaneseq  ;;  %v314_v27 = vld [vmem:[#allocation7 + $0xd0] sm:$0xff] }
  0x8a   :  { %1416 = vmatprep.subr.bf16.mxu0 %v1931_v1  ;;  %1444 = vmatprep.subr.bf16.mxu1 %v1443_v5  ;;  %v1495_v38 = vpack.c.bf16 %v253_v36, %v249_v35  ;;  %v252_v40 = vld [vmem:[#allocation5 + $0xe0] sm:$0xff]  ;;  %v257_v41 = vld [vmem:[#allocation5 + $0x108] sm:$0xff]  ;;  %v294_v5 = vld [vmem:[#allocation7 + $0x30] sm:$0xff] }
  0x8b   :  { %v261_v42 = vld [vmem:[#allocation5 + $0x128] sm:$0xff]  ;;  %v1497_v43 = vpack.c.bf16 %v252_v40, %v248_v39  ;;  %v256_v45 = vld [vmem:[#allocation5 + $0x100] sm:$0xff]  ;;  %v129_v6 = vand.u32 127, %v128_v3  ;;  %v318_v28 = vld [vmem:[#allocation7 + $0xf0] sm:$0xff] }
  0x8c   :  { %v1499_v44 = vpack.c.bf16 %v261_v42, %v257_v41  ;;  %v260_v46 = vld [vmem:[#allocation5 + $0x120] sm:$0xff]  ;;  %v265_v47 = vld [vmem:[#allocation5 + $0x148] sm:$0xff]  ;;  %v323_v29 = vld [vmem:[#allocation7 + $0x118] sm:$0xff] }
  0x8d   :  { %1418 = vmatpush3.bf16.msra.mxu0 %v1417_v4  ;;  %1446 = vmatpush1.bf16.msra.mxu1 %v1445_v12  ;;  %v269_v48 = vld [vmem:[#allocation5 + $0x168] sm:$0xff]  ;;  %v1501_v49 = vpack.c.bf16 %v260_v46, %v256_v45  ;;  %v264_v51 = vld [vmem:[#allocation5 + $0x140] sm:$0xff]  ;;  %v290_v4 = vld [vmem:[#allocation7 + $0x10] sm:$0xff] }
  0x8e   :  { %1452 = vmatprep.subr.bf16.mxu0 %v1451_v9  ;;  %1448 = vmatprep.subr.bf16.mxu1 %v1447_v13  ;;  %v1503_v50 = vpack.c.bf16 %v269_v48, %v265_v47  ;;  %v268_v52 = vld [vmem:[#allocation5 + $0x160] sm:$0xff]  ;;  %v273_v53 = vld [vmem:[#allocation5 + $0x188] sm:$0xff]  ;;  %v303_v9 = vld [vmem:[#allocation7 + $0x78] sm:$0xff]  ;;  %v1453_v10 = vpack.c.bf16 %v294_v5, %v290_v4 }
  0x8f   :  { %v277_v54 = vld [vmem:[#allocation5 + $0x1a8] sm:$0xff]  ;;  %v1505_v55 = vpack.c.bf16 %v268_v52, %v264_v51  ;;  %v272_v57 = vld [vmem:[#allocation5 + $0x180] sm:$0xff]  ;;  %v1455_v12 = vpack.c.bf16 %v303_v9, %v299_v7  ;;  %v298_v13 = vld [vmem:[#allocation7 + $0x50] sm:$0xff] }
  0x90   :  { %v1507_v56 = vpack.c.bf16 %v277_v54, %v273_v53  ;;  %v276_v58 = vld [vmem:[#allocation5 + $0x1a0] sm:$0xff]  ;;  %v281_v59 = vld [vmem:[#allocation5 + $0x1c8] sm:$0xff]  ;;  %v327_v30 = vld [vmem:[#allocation7 + $0x138] sm:$0xff] }
  0x91   :  { %1450 = vmatpush1.bf16.msra.mxu1 %v1449_v18  ;;  %v285_v60 = vld [vmem:[#allocation5 + $0x1e8] sm:$0xff]  ;;  %v1509_v61 = vpack.c.bf16 %v276_v58, %v272_v57  ;;  %v280_v63 = vld [vmem:[#allocation5 + $0x1c0] sm:$0xff]  ;;  %v1457_v18 = vpack.c.bf16 %v302_v14, %v298_v13  ;;  %v322_v33 = vld [vmem:[#allocation7 + $0x110] sm:$0xff] }
  0x92   :  { %1484 = vmatprep.subr.bf16.mxu1 %v1483_v19  ;;  %v1511_v62 = vpack.c.bf16 %v285_v60, %v281_v59  ;;  %v284_v0 = vld [vmem:[#allocation5 + $0x1e0] sm:$0xff]  ;;  %v1459_v19 = vpack.c.bf16 %v311_v16, %v307_v15  ;;  %v326_v34 = vld [vmem:[#allocation7 + $0x130] sm:$0xff]  ;;  %v331_v35 = vld [vmem:[#allocation7 + $0x158] sm:$0xff] }
  0x93   :  { %v1513_v2 = vpack.c.bf16 %v284_v0, %v280_v63  ;;  %v335_v36 = vld [vmem:[#allocation7 + $0x178] sm:$0xff]  ;;  %v330_v39 = vld [vmem:[#allocation7 + $0x150] sm:$0xff] }
  0x94   :  { %417 = vmatmul.mubr.f32.vlgmr.msra.gmra.mrb[0].mxu1 %v2118_v24  ;;  %v334_v40 = vld [vmem:[#allocation7 + $0x170] sm:$0xff]  ;;  %v339_v41 = vld [vmem:[#allocation7 + $0x198] sm:$0xff] }
  0x95   :  { %1486 = vmatpush1.bf16.msra.mxu1 %v1485_v25  ;;  %558 = vmatprep.mubr.f32.mxu1 %v1933_v8  ;;  %v1461_v25 = vpack.c.bf16 %v310_v21, %v306_v20  ;;  %v343_v42 = vld [vmem:[#allocation7 + $0x1b8] sm:$0xff]  ;;  %v338_v45 = vld [vmem:[#allocation7 + $0x190] sm:$0xff] }
  0x96   :  { %1488 = vmatprep.subr.bf16.mxu1 %v1487_v26  ;;  %v1463_v26 = vpack.c.bf16 %v319_v23, %v315_v22  ;;  %v342_v46 = vld [vmem:[#allocation7 + $0x1b0] sm:$0xff]  ;;  %v347_v47 = vld [vmem:[#allocation7 + $0x1d8] sm:$0xff] }
  0x97   :  { %v351_v48 = vld [vmem:[#allocation7 + $0x1f8] sm:$0xff]  ;;  %v346_v51 = vld [vmem:[#allocation7 + $0x1d0] sm:$0xff] }
  0x98   :  { %v350_v52 = vld [vmem:[#allocation7 + $0x1f0] sm:$0xff]  ;;  %v227_v53 = vld [vmem:[#allocation5 + $0x18] sm:$0xff] }
  0x99   :  { %1490 = vmatpush1.bf16.msra.mxu1 %v1489_v31  ;;  %v1465_v31 = vpack.c.bf16 %v318_v28, %v314_v27  ;;  %v231_v54 = vld [vmem:[#allocation5 + $0x38] sm:$0xff]  ;;  %v226_v57 = vld [vmem:[#allocation5 + $0x10] sm:$0xff] }
  0x9a   :  { %1492 = vmatprep.subr.bf16.mxu1 %v1491_v32  ;;  %v1467_v32 = vpack.c.bf16 %v327_v30, %v323_v29  ;;  %v230_v58 = vld [vmem:[#allocation5 + $0x30] sm:$0xff]  ;;  %v235_v59 = vld [vmem:[#allocation5 + $0x58] sm:$0xff] }
  0x9b   :  { %v239_v60 = vld [vmem:[#allocation5 + $0x78] sm:$0xff]  ;;  %v234_v63 = vld [vmem:[#allocation5 + $0x50] sm:$0xff] }
  0x9c   :  { %v238_v0 = vld [vmem:[#allocation5 + $0x70] sm:$0xff]  ;;  %v247_v4 = vld [vmem:[#allocation5 + $0xb8] sm:$0xff] }
  0x9d   :  { %1494 = vmatpush1.bf16.msra.mxu1 %v1493_v37  ;;  %v1469_v37 = vpack.c.bf16 %v326_v34, %v322_v33  ;;  %v1521_v5 = vpack.c.bf16 %v238_v0, %v234_v63  ;;  %v242_v7 = vld [vmem:[#allocation5 + $0x90] sm:$0xff]  ;;  %v259_v16 = vld [vmem:[#allocation5 + $0x118] sm:$0xff]  ;;  %v773_v63 = vld [vmem:[#allocation10 + $0x88] sm:$0xff] }
  0x9e   :  { %1496 = vmatprep.subr.bf16.mxu1 %v1495_v38  ;;  %v1471_v38 = vpack.c.bf16 %v335_v36, %v331_v35  ;;  %v246_v9 = vld [vmem:[#allocation5 + $0xb0] sm:$0xff]  ;;  %v267_v21 = vld [vmem:[#allocation5 + $0x158] sm:$0xff] }
  0x9f   :  { %v250_v14 = vld [vmem:[#allocation5 + $0xd0] sm:$0xff]  ;;  %v271_v22 = vld [vmem:[#allocation5 + $0x178] sm:$0xff] }
  0xa0   :  { %v254_v15 = vld [vmem:[#allocation5 + $0xf0] sm:$0xff]  ;;  %v275_v28 = vld [vmem:[#allocation5 + $0x198] sm:$0xff] }
  0xa1   :  { %1498 = vmatpush1.bf16.msra.mxu1 %v1497_v43  ;;  %v1473_v43 = vpack.c.bf16 %v334_v40, %v330_v39  ;;  %v262_v20 = vld [vmem:[#allocation5 + $0x130] sm:$0xff]  ;;  %v279_v29 = vld [vmem:[#allocation5 + $0x1b8] sm:$0xff] }
  0xa2   :  { %1500 = vmatprep.subr.bf16.mxu1 %v1499_v44  ;;  %v1475_v44 = vpack.c.bf16 %v343_v42, %v339_v41  ;;  %v270_v27 = vld [vmem:[#allocation5 + $0x170] sm:$0xff]  ;;  %v283_v34 = vld [vmem:[#allocation5 + $0x1d8] sm:$0xff]  ;;  %v757_v41 = vld [vmem:[#allocation10 + $0x8] sm:$0xff] }
  0xa3   :  { %v278_v33 = vld [vmem:[#allocation5 + $0x1b0] sm:$0xff]  ;;  %v287_v35 = vld [vmem:[#allocation5 + $0x1f8] sm:$0xff]  ;;  %v761_v42 = vld [vmem:[#allocation10 + $0x28] sm:$0xff] }
  0xa4   :  { %v286_v39 = vld [vmem:[#allocation5 + $0x1f0] sm:$0xff] }
  0xa5   :  { %1502 = vmatpush1.bf16.msra.mxu1 %v1501_v49  ;;  %v1477_v49 = vpack.c.bf16 %v342_v46, %v338_v45  ;;  %v763_v45 = vld [vmem:[#allocation10 + $0x38] sm:$0xff] }
  0xa6   :  { %1504 = vmatprep.subr.bf16.mxu1 %v1503_v50  ;;  %v1479_v50 = vpack.c.bf16 %v351_v48, %v347_v47  ;;  %v756_v47 = vld [vmem:[#allocation10] sm:$0xff] }
  0xa7   :  { %v760_v48 = vld [vmem:[#allocation10 + $0x20] sm:$0xff] }
  0xa9   :  { %1506 = vmatpush1.bf16.msra.mxu1 %v1505_v55  ;;  %v1481_v55 = vpack.c.bf16 %v350_v52, %v346_v51  ;;  %v765_v51 = vld [vmem:[#allocation10 + $0x48] sm:$0xff] }
  0xaa   :  { %1508 = vmatprep.subr.bf16.mxu1 %v1507_v56  ;;  %v1515_v56 = vpack.c.bf16 %v231_v54, %v227_v53  ;;  %v769_v52 = vld [vmem:[#allocation10 + $0x68] sm:$0xff]  ;;  %v767_v53 = vld [vmem:[#allocation10 + $0x58] sm:$0xff] }
  0xab   :  { %v771_v54 = vld [vmem:[#allocation10 + $0x78] sm:$0xff] }
  0xad   :  { %1510 = vmatpush1.bf16.msra.mxu1 %v1509_v61  ;;  %v1517_v61 = vpack.c.bf16 %v230_v58, %v226_v57  ;;  %v764_v57 = vld [vmem:[#allocation10 + $0x40] sm:$0xff] }
  0xae   :  { %1512 = vmatprep.subr.bf16.mxu1 %v1511_v62  ;;  %v1519_v62 = vpack.c.bf16 %v239_v60, %v235_v59  ;;  %v768_v58 = vld [vmem:[#allocation10 + $0x60] sm:$0xff]  ;;  %v1551_v59 = vpack.c.bf16 %v769_v52, %v765_v51  ;;  %v1583_v60 = vpack.c.bf16 %v771_v54, %v767_v53  ;;  %v798_v51 = vld [vmem:[#allocation10 + $0x150] sm:$0xff]  ;;  %v805_v54 = vld [vmem:[#allocation10 + $0x188] sm:$0xff] }
  0xaf   :  { %v802_v52 = vld [vmem:[#allocation10 + $0x170] sm:$0xff] }
  0xb0   :  { %v1601_v53 = vpack.c.bf16 %v802_v52, %v798_v51  ;;  %v710_v51 = vld [vmem:[#allocation8 + $0x90] sm:$0xff] }
  0xb1   :  { %1514 = vmatpush1.bf16.msra.mxu1 %v1513_v2  ;;  %v243_v2 = vld [vmem:[#allocation5 + $0x98] sm:$0xff]  ;;  %v714_v52 = vld [vmem:[#allocation8 + $0xb0] sm:$0xff] }
  0xee   :  { %v132_v11 = vpop.permute.xlu0 %131 }
  0xef   :  { %vm133_vm1 = vcmp.eq.s32.totalorder %v129_v6, %v132_v11  ;;  %v1523_v6 = vpack.c.bf16 %v247_v4, %v243_v2  ;;  %v255_v11 = vld [vmem:[#allocation5 + $0xf8] sm:$0xff]  ;;  %v777_v2 = vld [vmem:[#allocation10 + $0xa8] sm:$0xff] }
  0xf0   :  { %1358 = vmatmul.mubr.msk.f32.vlgmr.msra.gmra.mrb[0].mxu0 %vm133_vm1, %v1934_v17  ;;  %v263_v17 = vld [vmem:[#allocation5 + $0x138] sm:$0xff] }
  0xf1   :  { %1454 = vmatpush1.bf16.msra.mxu0 %v1453_v10  ;;  %487 = vmatprep.mubr.f32.mxu0 %v1933_v8  ;;  %v251_v10 = vld [vmem:[#allocation5 + $0xd8] sm:$0xff] }
  0xf2   :  { %1456 = vmatprep.subr.bf16.mxu0 %v1455_v12  ;;  %v1525_v12 = vpack.c.bf16 %v246_v9, %v242_v7  ;;  %v1527_v13 = vpack.c.bf16 %v255_v11, %v251_v10  ;;  %v775_v4 = vld [vmem:[#allocation10 + $0x98] sm:$0xff]  ;;  %v1553_v7 = vpack.c.bf16 %v768_v58, %v764_v57  ;;  %v772_v10 = vld [vmem:[#allocation10 + $0x80] sm:$0xff] }
  0xf3   :  { %v776_v11 = vld [vmem:[#allocation10 + $0xa0] sm:$0xff]  ;;  %v811_v58 = vld [vmem:[#allocation10 + $0x1b8] sm:$0xff] }
  0xf5   :  { %1458 = vmatpush1.bf16.msra.mxu0 %v1457_v18  ;;  %v1531_v18 = vpack.c.bf16 %v263_v17, %v259_v16  ;;  %v781_v16 = vld [vmem:[#allocation10 + $0xc8] sm:$0xff] }
  0xf6   :  { %1460 = vmatprep.subr.bf16.mxu0 %v1459_v19  ;;  %v258_v19 = vld [vmem:[#allocation5 + $0x110] sm:$0xff]  ;;  %v785_v17 = vld [vmem:[#allocation10 + $0xe8] sm:$0xff] }
  0xf7   :  { %v1533_v23 = vpack.c.bf16 %v262_v20, %v258_v19  ;;  %v1557_v19 = vpack.c.bf16 %v776_v11, %v772_v10  ;;  %v812_v10 = vld [vmem:[#allocation10 + $0x1c0] sm:$0xff] }
  0xf8   :  { %v816_v11 = vld [vmem:[#allocation10 + $0x1e0] sm:$0xff] }
  0xf9   :  { %1462 = vmatpush1.bf16.msra.mxu0 %v1461_v25  ;;  %v1535_v25 = vpack.c.bf16 %v271_v22, %v267_v21  ;;  %v780_v21 = vld [vmem:[#allocation10 + $0xc0] sm:$0xff] }
  0xfa   :  { %1464 = vmatprep.subr.bf16.mxu0 %v1463_v26  ;;  %v266_v26 = vld [vmem:[#allocation5 + $0x150] sm:$0xff]  ;;  %v784_v22 = vld [vmem:[#allocation10 + $0xe0] sm:$0xff] }
  0xfb   :  { %v1537_v30 = vpack.c.bf16 %v270_v27, %v266_v26  ;;  %v782_v26 = vld [vmem:[#allocation10 + $0xd0] sm:$0xff] }
  0xfc   :  { %v786_v27 = vld [vmem:[#allocation10 + $0xf0] sm:$0xff] }
  0xfd   :  { %1466 = vmatpush1.bf16.msra.mxu0 %v1465_v31  ;;  %v1539_v31 = vpack.c.bf16 %v279_v29, %v275_v28  ;;  %v789_v28 = vld [vmem:[#allocation10 + $0x108] sm:$0xff] }
  0xfe   :  { %1468 = vmatprep.subr.bf16.mxu0 %v1467_v32  ;;  %v274_v32 = vld [vmem:[#allocation5 + $0x190] sm:$0xff]  ;;  %v793_v29 = vld [vmem:[#allocation10 + $0x128] sm:$0xff] }
  0xff   :  { %v1541_v36 = vpack.c.bf16 %v278_v33, %v274_v32  ;;  %v1561_v32 = vpack.c.bf16 %v784_v22, %v780_v21  ;;  %v1593_v33 = vpack.c.bf16 %v786_v27, %v782_v26  ;;  %v692_v21 = vld [vmem:[#allocation8] sm:$0xff]  ;;  %v694_v26 = vld [vmem:[#allocation8 + $0x10] sm:$0xff] }
 0x100   :  { %v696_v22 = vld [vmem:[#allocation8 + $0x20] sm:$0xff]  ;;  %v698_v27 = vld [vmem:[#allocation8 + $0x30] sm:$0xff] }
 0x101   :  { %1470 = vmatpush1.bf16.msra.mxu0 %v1469_v37  ;;  %v1543_v37 = vpack.c.bf16 %v287_v35, %v283_v34  ;;  %v1563_v34 = vpack.c.bf16 %v793_v29, %v789_v28  ;;  %v1283_v28 = vld [vmem:[%s2207_s2 + $0x2] sm:$0x3]  ;;  %v1645_v29 = vpack.c.bf16 %v698_v27, %v694_v26  ;;  %v734_v26 = vld [vmem:[#allocation8 + $0x150] sm:$0xff] }
 0x102   :  { %1472 = vmatprep.subr.bf16.mxu0 %v1471_v38  ;;  %v282_v38 = vld [vmem:[#allocation5 + $0x1d0] sm:$0xff] }
 0x103   :  { %v1545_v40 = vpack.c.bf16 %v286_v39, %v282_v38  ;;  %v790_v38 = vld [vmem:[#allocation10 + $0x110] sm:$0xff] }
 0x104   :  { %v738_v27 = vld [vmem:[#allocation8 + $0x170] sm:$0xff] }
 0x105   :  { %1474 = vmatpush1.bf16.msra.mxu0 %v1473_v43  ;;  %v759_v43 = vld [vmem:[#allocation10 + $0x18] sm:$0xff] }
 0x106   :  { %1476 = vmatprep.subr.bf16.mxu0 %v1475_v44  ;;  %v1547_v44 = vpack.c.bf16 %v761_v42, %v757_v41  ;;  %v1579_v46 = vpack.c.bf16 %v763_v45, %v759_v43  ;;  %v797_v42 = vld [vmem:[#allocation10 + $0x148] sm:$0xff] }
 0x107   :  { %v801_v43 = vld [vmem:[#allocation10 + $0x168] sm:$0xff] }
 0x108   :  { %1548 = vmatprep.subr.bf16.mxu1 %v1547_v44  ;;  %v799_v44 = vld [vmem:[#allocation10 + $0x158] sm:$0xff]  ;;  %v1567_v45 = vpack.c.bf16 %v801_v43, %v797_v42  ;;  %v709_v42 = vld [vmem:[#allocation8 + $0x88] sm:$0xff] }
 0x109   :  { %1478 = vmatpush1.bf16.msra.mxu0 %v1477_v49  ;;  %v758_v49 = vld [vmem:[#allocation10 + $0x10] sm:$0xff]  ;;  %v713_v43 = vld [vmem:[#allocation8 + $0xa8] sm:$0xff] }
 0x10a   :  { %1480 = vmatprep.subr.bf16.mxu0 %v1479_v50  ;;  %v762_v50 = vld [vmem:[#allocation10 + $0x30] sm:$0xff] }
 0x10d   :  { %1482 = vmatpush1.bf16.msra.mxu0 %v1481_v55  ;;  %v1549_v55 = vpack.c.bf16 %v760_v48, %v756_v47  ;;  %v796_v47 = vld [vmem:[#allocation10 + $0x140] sm:$0xff] }
 0x10e   :  { %1516 = vmatprep.subr.bf16.mxu0 %v1515_v56  ;;  %v1581_v56 = vpack.c.bf16 %v762_v50, %v758_v49  ;;  %v800_v48 = vld [vmem:[#allocation10 + $0x160] sm:$0xff] }
 0x10f   :  { %v1569_v50 = vpack.c.bf16 %v800_v48, %v796_v47  ;;  %v708_v47 = vld [vmem:[#allocation8 + $0x80] sm:$0xff] }
 0x110   :  { %488 = vmatmul.mubr.f32.vlgmr.msra.gmra.mrb[2].mxu0 %v2118_v24  ;;  %v1529_v24 = vpack.c.bf16 %v254_v15, %v250_v14  ;;  %v774_v14 = vld [vmem:[#allocation10 + $0x90] sm:$0xff]  ;;  %v712_v48 = vld [vmem:[#allocation8 + $0xa0] sm:$0xff] }
 0x111   :  { %1518 = vmatpush1.bf16.msra.mxu0 %v1517_v61  ;;  %629 = vmatprep.mubr.f32.mxu0 %v1933_v8  ;;  %v766_v61 = vld [vmem:[#allocation10 + $0x50] sm:$0xff] }
 0x112   :  { %1520 = vmatprep.subr.bf16.mxu0 %v1519_v62  ;;  %v770_v62 = vld [vmem:[#allocation10 + $0x70] sm:$0xff] }
 0x113   :  { %v1585_v9 = vpack.c.bf16 %v770_v62, %v766_v61  ;;  %v778_v15 = vld [vmem:[#allocation10 + $0xb0] sm:$0xff] }
 0x114   :  { %v1589_v20 = vpack.c.bf16 %v778_v15, %v774_v14  ;;  %v814_v14 = vld [vmem:[#allocation10 + $0x1d0] sm:$0xff] }
 0x115   :  { %1522 = vmatpush1.bf16.msra.mxu0 %v1521_v5  ;;  %v779_v5 = vld [vmem:[#allocation10 + $0xb8] sm:$0xff]  ;;  %v818_v15 = vld [vmem:[#allocation10 + $0x1f0] sm:$0xff] }
 0x116   :  { %1524 = vmatprep.subr.bf16.mxu0 %v1523_v6 }
 0x119   :  { %1526 = vmatpush1.bf16.msra.mxu0 %v1525_v12  ;;  %v1555_v12 = vpack.c.bf16 %v777_v2, %v773_v63  ;;  %v806_v63 = vld [vmem:[#allocation10 + $0x190] sm:$0xff] }
 0x11a   :  { %1528 = vmatprep.subr.bf16.mxu0 %v1527_v13  ;;  %v1587_v13 = vpack.c.bf16 %v779_v5, %v775_v4  ;;  %v813_v4 = vld [vmem:[#allocation10 + $0x1c8] sm:$0xff] }
 0x11b   :  { %v817_v5 = vld [vmem:[#allocation10 + $0x1e8] sm:$0xff] }
 0x11d   :  { %1530 = vmatpush1.bf16.msra.mxu0 %v1529_v24  ;;  %v783_v24 = vld [vmem:[#allocation10 + $0xd8] sm:$0xff] }
 0x11e   :  { %1532 = vmatprep.subr.bf16.mxu0 %v1531_v18  ;;  %v787_v18 = vld [vmem:[#allocation10 + $0xf8] sm:$0xff] }
 0x121   :  { %1534 = vmatpush1.bf16.msra.mxu0 %v1533_v23  ;;  %v1559_v23 = vpack.c.bf16 %v785_v17, %v781_v16  ;;  %v1609_v16 = vpack.c.bf16 %v818_v15, %v814_v14  ;;  %v693_v17 = vld [vmem:[#allocation8 + $0x8] sm:$0xff]  ;;  %v730_v14 = vld [vmem:[#allocation8 + $0x130] sm:$0xff] }
 0x122   :  { %1536 = vmatprep.subr.bf16.mxu0 %v1535_v25  ;;  %v1591_v25 = vpack.c.bf16 %v787_v18, %v783_v24  ;;  %v697_v24 = vld [vmem:[#allocation8 + $0x28] sm:$0xff]  ;;  %v695_v18 = vld [vmem:[#allocation8 + $0x18] sm:$0xff] }
 0x125   :  { %1538 = vmatpush1.bf16.msra.mxu0 %v1537_v30  ;;  %v791_v30 = vld [vmem:[#allocation10 + $0x118] sm:$0xff] }
 0x126   :  { %1540 = vmatprep.subr.bf16.mxu0 %v1539_v31  ;;  %v795_v31 = vld [vmem:[#allocation10 + $0x138] sm:$0xff] }
 0x127   :  { %v1595_v35 = vpack.c.bf16 %v795_v31, %v791_v30  ;;  %v701_v30 = vld [vmem:[#allocation8 + $0x48] sm:$0xff] }
 0x128   :  { %v705_v31 = vld [vmem:[#allocation8 + $0x68] sm:$0xff] }
 0x129   :  { %1542 = vmatpush1.bf16.msra.mxu0 %v1541_v36  ;;  %v788_v36 = vld [vmem:[#allocation10 + $0x100] sm:$0xff] }
 0x12a   :  { %1544 = vmatprep.subr.bf16.mxu0 %v1543_v37  ;;  %v792_v37 = vld [vmem:[#allocation10 + $0x120] sm:$0xff] }
 0x12b   :  { %v1565_v39 = vpack.c.bf16 %v792_v37, %v788_v36  ;;  %v704_v36 = vld [vmem:[#allocation8 + $0x60] sm:$0xff] }
 0x12d   :  { %1546 = vmatpush1.bf16.msra.mxu0 %v1545_v40  ;;  %v794_v40 = vld [vmem:[#allocation10 + $0x130] sm:$0xff] }
 0x12e   :  { %1580 = vmatprep.subr.bf16.mxu0 %v1579_v46  ;;  %v1597_v41 = vpack.c.bf16 %v794_v40, %v790_v38  ;;  %v803_v46 = vld [vmem:[#allocation10 + $0x178] sm:$0xff]  ;;  %v706_v40 = vld [vmem:[#allocation8 + $0x70] sm:$0xff] }
 0x12f   :  { %v1599_v49 = vpack.c.bf16 %v803_v46, %v799_v44  ;;  %v711_v44 = vld [vmem:[#allocation8 + $0x98] sm:$0xff] }
 0x130   :  { %v715_v46 = vld [vmem:[#allocation8 + $0xb8] sm:$0xff] }
 0x1c3   :  { %v218_v0 = vpop.f32.mrb[0].mxu0 }
 0x1c4   :  { %v1359_v6 = vpop.f32.mrb[1].mxu0  ;;  %559 = vmatmul.mubr.f32.vlgmr.msra.gmra.mrb[0].mxu1 %v218_v0  ;;  %630 = vmatmul.mubr.f32.vlgmr.msra.gmra.mrb[2].mxu0 %v218_v0  ;;  %v810_v0 = vld [vmem:[#allocation10 + $0x1b0] sm:$0xff] }
 0x1c5   :  { %1550 = vmatpush1.bf16.msra.mxu1 %v1549_v55  ;;  %1582 = vmatpush1.bf16.msra.mxu0 %v1581_v56  ;;  %v809_v55 = vld [vmem:[#allocation10 + $0x1a8] sm:$0xff]  ;;  %v807_v56 = vld [vmem:[#allocation10 + $0x198] sm:$0xff]  ;;  %v1605_v2 = vpack.c.bf16 %v810_v0, %v806_v63  ;;  %v718_v63 = vld [vmem:[#allocation8 + $0xd0] sm:$0xff] }
 0x1c6   :  { %1552 = vmatprep.subr.bf16.mxu1 %v1551_v59  ;;  %1584 = vmatprep.subr.bf16.mxu0 %v1583_v60  ;;  %v1571_v57 = vpack.c.bf16 %v809_v55, %v805_v54  ;;  %v804_v59 = vld [vmem:[#allocation10 + $0x180] sm:$0xff]  ;;  %v1603_v61 = vpack.c.bf16 %v811_v58, %v807_v56  ;;  %v815_v6 = vld [vmem:[#allocation10 + $0x1d8] sm:$0xff]  ;;  %v717_v54 = vld [vmem:[#allocation8 + $0xc8] sm:$0xff] }
 0x1c7   :  { %884 = vmatprep.mubr.f32.mxu1 %v1933_v8  ;;  %955 = vmatprep.mubr.f32.mxu0 %v1933_v8  ;;  %v808_v60 = vld [vmem:[#allocation10 + $0x1a0] sm:$0xff]  ;;  %v721_v55 = vld [vmem:[#allocation8 + $0xe8] sm:$0xff]  ;;  %v719_v56 = vld [vmem:[#allocation8 + $0xd8] sm:$0xff] }
 0x1c8   :  { %v1573_v62 = vpack.c.bf16 %v808_v60, %v804_v59  ;;  %v723_v58 = vld [vmem:[#allocation8 + $0xf8] sm:$0xff]  ;;  %v716_v59 = vld [vmem:[#allocation8 + $0xc0] sm:$0xff]  ;;  %v722_v0 = vld [vmem:[#allocation8 + $0xf0] sm:$0xff] }
 0x1c9   :  { %1554 = vmatpush1.bf16.msra.mxu1 %v1553_v7  ;;  %1586 = vmatpush1.bf16.msra.mxu0 %v1585_v9  ;;  %v1575_v7 = vpack.c.bf16 %v817_v5, %v813_v4  ;;  %v819_v9 = vld [vmem:[#allocation10 + $0x1f8] sm:$0xff]  ;;  %v720_v60 = vld [vmem:[#allocation8 + $0xe0] sm:$0xff]  ;;  %v725_v4 = vld [vmem:[#allocation8 + $0x108] sm:$0xff] }
 0x1ca   :  { %1556 = vmatprep.subr.bf16.mxu1 %v1555_v12  ;;  %1588 = vmatprep.subr.bf16.mxu0 %v1587_v13  ;;  %v1607_v12 = vpack.c.bf16 %v819_v9, %v815_v6  ;;  %v1577_v13 = vpack.c.bf16 %v816_v11, %v812_v10  ;;  %v729_v5 = vld [vmem:[#allocation8 + $0x128] sm:$0xff]  ;;  %v731_v9 = vld [vmem:[#allocation8 + $0x138] sm:$0xff]  ;;  %v724_v10 = vld [vmem:[#allocation8 + $0x100] sm:$0xff] }
 0x1cb   :  { %v1627_v6 = vpack.c.bf16 %v729_v5, %v725_v4 }
 0x1cd   :  { %1558 = vmatpush1.bf16.msra.mxu1 %v1557_v19  ;;  %1590 = vmatpush1.bf16.msra.mxu0 %v1589_v20  ;;  %v1611_v19 = vpack.c.bf16 %v697_v24, %v693_v17  ;;  %v699_v20 = vld [vmem:[#allocation8 + $0x38] sm:$0xff]  ;;  %v733_v17 = vld [vmem:[#allocation8 + $0x148] sm:$0xff] }
 0x1ce   :  { %1560 = vmatprep.subr.bf16.mxu1 %v1559_v23  ;;  %1592 = vmatprep.subr.bf16.mxu0 %v1591_v25  ;;  %v1643_v23 = vpack.c.bf16 %v699_v20, %v695_v18  ;;  %v1613_v25 = vpack.c.bf16 %v696_v22, %v692_v21  ;;  %v737_v24 = vld [vmem:[#allocation8 + $0x168] sm:$0xff]  ;;  %v735_v18 = vld [vmem:[#allocation8 + $0x158] sm:$0xff]  ;;  %v732_v21 = vld [vmem:[#allocation8 + $0x140] sm:$0xff] }
 0x1cf   :  { %v739_v20 = vld [vmem:[#allocation8 + $0x178] sm:$0xff]  ;;  %v736_v22 = vld [vmem:[#allocation8 + $0x160] sm:$0xff] }
 0x1d1   :  { %1562 = vmatpush1.bf16.msra.mxu1 %v1561_v32  ;;  %1594 = vmatpush1.bf16.msra.mxu0 %v1593_v33  ;;  %v703_v32 = vld [vmem:[#allocation8 + $0x58] sm:$0xff]  ;;  %v1615_v33 = vpack.c.bf16 %v705_v31, %v701_v30  ;;  %v745_v30 = vld [vmem:[#allocation8 + $0x1a8] sm:$0xff] }
 0x1d2   :  { %1564 = vmatprep.subr.bf16.mxu1 %v1563_v34  ;;  %1596 = vmatprep.subr.bf16.mxu0 %v1595_v35  ;;  %v707_v34 = vld [vmem:[#allocation8 + $0x78] sm:$0xff]  ;;  %v700_v35 = vld [vmem:[#allocation8 + $0x40] sm:$0xff] }
 0x1d3   :  { %v1647_v37 = vpack.c.bf16 %v707_v34, %v703_v32  ;;  %v1617_v38 = vpack.c.bf16 %v704_v36, %v700_v35  ;;  %v743_v31 = vld [vmem:[#allocation8 + $0x198] sm:$0xff]  ;;  %v740_v35 = vld [vmem:[#allocation8 + $0x180] sm:$0xff] }
 0x1d4   :  { %v747_v32 = vld [vmem:[#allocation8 + $0x1b8] sm:$0xff]  ;;  %v744_v36 = vld [vmem:[#allocation8 + $0x1a0] sm:$0xff] }
 0x1d5   :  { %1566 = vmatpush1.bf16.msra.mxu1 %v1565_v39  ;;  %1598 = vmatpush1.bf16.msra.mxu0 %v1597_v41  ;;  %v702_v39 = vld [vmem:[#allocation8 + $0x50] sm:$0xff]  ;;  %v1667_v34 = vpack.c.bf16 %v747_v32, %v743_v31  ;;  %v1161_v32 = vld [vmem:[#allocation11 + $0x18] sm:$0xff] }
 0x1d6   :  { %1568 = vmatprep.subr.bf16.mxu1 %v1567_v45  ;;  %1600 = vmatprep.subr.bf16.mxu0 %v1599_v49  ;;  %v1649_v41 = vpack.c.bf16 %v706_v40, %v702_v39  ;;  %v1619_v45 = vpack.c.bf16 %v713_v43, %v709_v42  ;;  %v1651_v49 = vpack.c.bf16 %v715_v46, %v711_v44  ;;  %v746_v39 = vld [vmem:[#allocation8 + $0x1b0] sm:$0xff]  ;;  %v749_v40 = vld [vmem:[#allocation8 + $0x1c8] sm:$0xff]  ;;  %v751_v44 = vld [vmem:[#allocation8 + $0x1d8] sm:$0xff] }
 0x1d7   :  { %v748_v46 = vld [vmem:[#allocation8 + $0x1c0] sm:$0xff]  ;;  %v1160_v31 = vld [vmem:[#allocation11 + $0x10] sm:$0xff] }
 0x1d9   :  { %1570 = vmatpush1.bf16.msra.mxu1 %v1569_v50  ;;  %1602 = vmatpush1.bf16.msra.mxu0 %v1601_v53  ;;  %v1621_v50 = vpack.c.bf16 %v712_v48, %v708_v47  ;;  %v1653_v53 = vpack.c.bf16 %v714_v52, %v710_v51  ;;  %v752_v48 = vld [vmem:[#allocation8 + $0x1e0] sm:$0xff] }
 0x1da   :  { %1572 = vmatprep.subr.bf16.mxu1 %v1571_v57  ;;  %1604 = vmatprep.subr.bf16.mxu0 %v1603_v61  ;;  %v1623_v57 = vpack.c.bf16 %v721_v55, %v717_v54  ;;  %v1655_v61 = vpack.c.bf16 %v723_v58, %v719_v56  ;;  %v1641_v51 = vpack.c.bf16 %v752_v48, %v748_v46  ;;  %v636_v55 = vld [vmem:[%s2211_s6] sm:$0xf]  ;;  %v1171_v46 = vld [vmem:[#allocation11 + $0x68] sm:$0xff]  ;;  %v1172_v48 = vld [vmem:[#allocation11 + $0x70] sm:$0xff] }
 0x1dd   :  { %1574 = vmatpush1.bf16.msra.mxu1 %v1573_v62  ;;  %1606 = vmatpush1.bf16.msra.mxu0 %v1605_v2  ;;  %v1625_v62 = vpack.c.bf16 %v720_v60, %v716_v59  ;;  %v1657_v2 = vpack.c.bf16 %v722_v0, %v718_v63 }
 0x1de   :  { %1576 = vmatprep.subr.bf16.mxu1 %v1575_v7  ;;  %1608 = vmatprep.subr.bf16.mxu0 %v1607_v12  ;;  %v727_v7 = vld [vmem:[#allocation8 + $0x118] sm:$0xff]  ;;  %v728_v12 = vld [vmem:[#allocation8 + $0x120] sm:$0xff] }
 0x1df   :  { %v1659_v11 = vpack.c.bf16 %v731_v9, %v727_v7  ;;  %v1629_v15 = vpack.c.bf16 %v728_v12, %v724_v10 }
 0x1e1   :  { %1578 = vmatpush1.bf16.msra.mxu1 %v1577_v13  ;;  %1610 = vmatpush1.bf16.msra.mxu0 %v1609_v16  ;;  %v726_v13 = vld [vmem:[#allocation8 + $0x110] sm:$0xff] }
 0x1e2   :  { %1612 = vmatprep.subr.bf16.mxu1 %v1611_v19  ;;  %1644 = vmatprep.subr.bf16.mxu0 %v1643_v23  ;;  %v1661_v16 = vpack.c.bf16 %v730_v14, %v726_v13  ;;  %v1631_v19 = vpack.c.bf16 %v737_v24, %v733_v17  ;;  %v1663_v23 = vpack.c.bf16 %v739_v20, %v735_v18  ;;  %v223_v24 = vld [vmem:[%s2208_s3] sm:$0x3] }
 0x1e4   :  { %885 = vmatmul.mubr.f32.vlgmr.msra.gmra.mrb[2].mxu1 %v1283_v28  ;;  %956 = vmatmul.mubr.f32.vlgmr.msra.gmra.mrb[4].mxu0 %v1283_v28  ;;  %v741_v28 = vld [vmem:[#allocation8 + $0x188] sm:$0xff] }
 0x1e5   :  { %1614 = vmatpush1.bf16.msra.mxu1 %v1613_v25  ;;  %1646 = vmatpush1.bf16.msra.mxu0 %v1645_v29  ;;  %v1633_v25 = vpack.c.bf16 %v736_v22, %v732_v21  ;;  %v1665_v29 = vpack.c.bf16 %v738_v27, %v734_v26 }
 0x1e6   :  { %1026 = vmatprep.mubr.f32.mxu1 %v1933_v8  ;;  %1616 = vmatprep.subr.bf16.mxu1 %v1615_v33  ;;  %v1635_v33 = vpack.c.bf16 %v745_v30, %v741_v28  ;;  %v1158_v28 = vld [vmem:[#allocation11] sm:$0xff] }
 0x1e7   :  { %1097 = vmatprep.mubr.f32.mxu0 %v1933_v8  ;;  %1648 = vmatprep.subr.bf16.mxu0 %v1647_v37  ;;  %v742_v37 = vld [vmem:[#allocation8 + $0x190] sm:$0xff] }
 0x1e8   :  { %v1669_v42 = vpack.c.bf16 %v746_v39, %v742_v37  ;;  %v1164_v37 = vld [vmem:[#allocation11 + $0x30] sm:$0xff]  ;;  %v1166_v39 = vld [vmem:[#allocation11 + $0x40] sm:$0xff] }
 0x1e9   :  { %1618 = vmatpush1.bf16.msra.mxu1 %v1617_v38  ;;  %1650 = vmatpush1.bf16.msra.mxu0 %v1649_v41  ;;  %v1637_v38 = vpack.c.bf16 %v744_v36, %v740_v35  ;;  %v753_v41 = vld [vmem:[#allocation8 + $0x1e8] sm:$0xff] }
 0x1ea   :  { %1620 = vmatprep.subr.bf16.mxu1 %v1619_v45  ;;  %1652 = vmatprep.subr.bf16.mxu0 %v1651_v49  ;;  %v1639_v43 = vpack.c.bf16 %v753_v41, %v749_v40  ;;  %v755_v45 = vld [vmem:[#allocation8 + $0x1f8] sm:$0xff]  ;;  %v750_v49 = vld [vmem:[#allocation8 + $0x1d0] sm:$0xff]  ;;  %v1163_v35 = vld [vmem:[#allocation11 + $0x28] sm:$0xff] }
 0x1eb   :  { %v1671_v47 = vpack.c.bf16 %v755_v45, %v751_v44  ;;  %v1167_v40 = vld [vmem:[#allocation11 + $0x48] sm:$0xff]  ;;  %v1170_v44 = vld [vmem:[#allocation11 + $0x60] sm:$0xff] }
 0x1ec   :  { %v1688_v41 = vpack.c.bf16 %v1167_v40, %v1166_v39 }
 0x1ed   :  { %1622 = vmatpush1.bf16.msra.mxu1 %v1621_v50  ;;  %1654 = vmatpush1.bf16.msra.mxu0 %v1653_v53  ;;  %v754_v50 = vld [vmem:[#allocation8 + $0x1f0] sm:$0xff]  ;;  %v2135_v53 = vshrl.u32 %v128_v3, 7 }
 0x1ee   :  { %1624 = vmatprep.subr.bf16.mxu1 %v1623_v57  ;;  %1656 = vmatprep.subr.bf16.mxu0 %v1655_v61  ;;  %v1673_v52 = vpack.c.bf16 %v754_v50, %v750_v49  ;;  %v1173_v49 = vld [vmem:[#allocation11 + $0x78] sm:$0xff] }
 0x1ef   :  { %v640_v54 = vsub.s32 0, %v2135_v53  ;;  %v644_v56 = vsub.s32 1, %v2135_v53  ;;  %v652_v61 = vsub.s32 3, %v2135_v53  ;;  %v1697_v50 = vpack.c.bf16 %v1173_v49, %v1172_v48 }
 0x1f1   :  { %1626 = vmatpush1.bf16.msra.mxu1 %v1625_v62  ;;  %1658 = vmatpush1.bf16.msra.mxu0 %v1657_v2  ;;  %v641_v57 = vrot.slane %v636_v55, %v640_v54  ;;  %v645_v58 = vrot.slane %v636_v55, %v644_v56  ;;  %v653_v5 = vrot.slane %v636_v55, %v652_v61 }
 0x1f2   :  { %1628 = vmatprep.subr.bf16.mxu1 %v1627_v6  ;;  %1660 = vmatprep.subr.bf16.mxu0 %v1659_v11  ;;  %v648_v6 = vsub.s32 2, %v2135_v53 }
 0x1f4   :  { %v649_v9 = vrot.slane %v636_v55, %v648_v6 }
 0x1f5   :  { %1630 = vmatpush1.bf16.msra.mxu1 %v1629_v15  ;;  %1662 = vmatpush1.bf16.msra.mxu0 %v1661_v16 }
 0x1f6   :  { %1632 = vmatprep.subr.bf16.mxu1 %v1631_v19  ;;  %1664 = vmatprep.subr.bf16.mxu0 %v1663_v23 }
 0x1f9   :  { %1634 = vmatpush1.bf16.msra.mxu1 %v1633_v25  ;;  %1666 = vmatpush1.bf16.msra.mxu0 %v1665_v29  ;;  %v1159_v29 = vld [vmem:[#allocation11 + $0x8] sm:$0xff] }
 0x1fa   :  { %1636 = vmatprep.subr.bf16.mxu1 %v1635_v33  ;;  %1668 = vmatprep.subr.bf16.mxu0 %v1667_v34  ;;  %v1676_v30 = vpack.c.bf16 %v1159_v29, %v1158_v28  ;;  %v1679_v33 = vpack.c.bf16 %v1161_v32, %v1160_v31  ;;  %v1162_v34 = vld [vmem:[#allocation11 + $0x20] sm:$0xff] }
 0x1fb   :  { %v1682_v36 = vpack.c.bf16 %v1163_v35, %v1162_v34 }
 0x1fd   :  { %1638 = vmatpush1.bf16.msra.mxu1 %v1637_v38  ;;  %1670 = vmatpush1.bf16.msra.mxu0 %v1669_v42  ;;  %v1168_v42 = vld [vmem:[#allocation11 + $0x50] sm:$0xff] }
 0x1fe   :  { %1640 = vmatprep.subr.bf16.mxu1 %v1639_v43  ;;  %1672 = vmatprep.subr.bf16.mxu0 %v1671_v47  ;;  %v1169_v43 = vld [vmem:[#allocation11 + $0x58] sm:$0xff]  ;;  %v1694_v47 = vpack.c.bf16 %v1171_v46, %v1170_v44 }
 0x1ff   :  { %v1691_v45 = vpack.c.bf16 %v1169_v43, %v1168_v42 }
 0x201   :  { %1642 = vmatpush1.bf16.msra.mxu1 %v1641_v51  ;;  %1674 = vmatpush1.bf16.msra.mxu0 %v1673_v52  ;;  %v1104_v51 = vld [vmem:[%s2214_s9] sm:$0xf] }
 0x202   :  { %1675 = vmatprep.subr.bf16.mxu1 %v1931_v1  ;;  %v1109_v52 = vrot.slane %v1104_v51, %v640_v54  ;;  %v1113_v55 = vrot.slane %v1104_v51, %v644_v56  ;;  %v1117_v54 = vrot.slane %v1104_v51, %v648_v6 }
 0x297   :  { %v560_v59 = vpop.f32.mrb[0].mxu1  ;;  %v631_v60 = vpop.f32.mrb[2].mxu0 }
 0x298   :  { %v658_v3 = vadd.f32 %v641_v57, %v560_v59  ;;  %v562_v62 = vpop.f32.mrb[1].mxu1  ;;  %v633_v63 = vpop.f32.mrb[3].mxu0  ;;  %v660_v11 = vadd.f32 %v649_v9, %v631_v60 }
 0x299   :  { %v659_v0 = vadd.f32 %v645_v58, %v562_v62  ;;  %v661_v7 = vadd.f32 %v653_v5, %v633_v63 }
 0x29a   :  { %v1280_v2 = vmul.f32 -1.442695, %v658_v3 }
 0x29b   :  { %v1281_v4 = vmul.f32 -1.442695, %v659_v0  ;;  %v1282_v10 = vmul.f32 -1.442695, %v661_v7 }
 0x29c   :  { %1724 = vpow2.f32 %v1280_v2 }
 0x29d   :  { %1726 = vpow2.f32 %v1281_v4 }
 0x29e   :  { %1728 = vpow2.f32 %v1282_v10 }
 0x29f   :  { %1730 = vtanh.f32 %v660_v11 }
 0x2a6   :  { %v1725_v12 = vpop.eup %1724 }
 0x2a7   :  { %v1727_v13 = vpop.eup %1726  ;;  %v665_v14 = vadd.f32 1.0, %v1725_v12 }
 0x2a8   :  { %v671_v15 = vadd.f32 1.0, %v1727_v13  ;;  %v1729_v16 = vpop.eup %1728 }
 0x2a9   :  { %1732 = vrcp.f32 %v665_v14  ;;  %v1731_v17 = vpop.eup %1730  ;;  %v678_v21 = vadd.f32 1.0, %v1729_v16 }
 0x2aa   :  { %1734 = vrcp.f32 %v671_v15 }
 0x2ab   :  { %1736 = vrcp.f32 %v678_v21 }
 0x2b3   :  { %v1733_v18 = vpop.eup %1732 }
 0x2b4   :  { %v1735_v19 = vpop.eup %1734  ;;  %v682_v20 = vmul.f32 %v1733_v18, %v1731_v17 }
 0x2b5   :  { %v681_v22 = vmul.f32 %v1735_v19, %v223_v24  ;;  %v1737_v25 = vpop.eup %1736  ;;  %v1290_v19 = vld [vmem:[%s2216_s11] ss:$0 sm:$0xff] }
 0x2b7   :  { %v683_v23 = vadd.f32 %v682_v20, %v681_v22 }
 0x2b9   :  { %687 = vst [vmem:[%s2219_s14] sm:$0x3] %v683_v23  ;;  %1738 = vtanh.f32 %v683_v23 }
 0x2c3   :  { %v1739_v26 = vpop.eup %1738 }
 0x2c4   :  { %v685_v27 = vmul.f32 %v1739_v26, %v1737_v25 }
 0x2c6   :  { %686 = vst [vmem:[%s2218_s13] sm:$0x3] %v685_v27  ;;  %1027 = vmatmul.mubr.f32.vlgmr.msra.gmra.mrb[2].mxu1 %v685_v27  ;;  %1098 = vmatmul.mubr.f32.vlgmr.msra.gmra.mrb[4].mxu0 %v685_v27 }
 0x2c7   :  { %1392 = vmatprep.mubr.msk.f32.mxu1 %vm1932_vm0, %v1933_v8  ;;  %1677 = vmatpush3.bf16.msra.mxu1 %v1676_v30  ;;  %v1165_v8 = vld [vmem:[#allocation11 + $0x38] sm:$0xff] }
 0x2c8   :  { %1678 = vmatprep.subr.bf16.mxu1 %v1931_v1  ;;  %v1685_v38 = vpack.c.bf16 %v1165_v8, %v1164_v37 }
 0x2cb   :  { %1680 = vmatpush3.bf16.msra.mxu1 %v1679_v33 }
 0x2cc   :  { %1681 = vmatprep.subr.bf16.mxu1 %v1931_v1 }
 0x2cf   :  { %1683 = vmatpush3.bf16.msra.mxu1 %v1682_v36 }
 0x2d0   :  { %1684 = vmatprep.subr.bf16.mxu1 %v1931_v1 }
 0x2d3   :  { %1686 = vmatpush3.bf16.msra.mxu1 %v1685_v38 }
 0x2d4   :  { %1687 = vmatprep.subr.bf16.mxu1 %v1931_v1 }
 0x2d7   :  { %1689 = vmatpush3.bf16.msra.mxu1 %v1688_v41 }
 0x2d8   :  { %1690 = vmatprep.subr.bf16.mxu1 %v1931_v1 }
 0x2db   :  { %1692 = vmatpush3.bf16.msra.mxu1 %v1691_v45 }
 0x2dc   :  { %1693 = vmatprep.subr.bf16.mxu1 %v1931_v1 }
 0x2df   :  { %1695 = vmatpush3.bf16.msra.mxu1 %v1694_v47 }
 0x2e0   :  { %1696 = vmatprep.subr.bf16.mxu1 %v1931_v1  ;;  %v1121_v1 = vrot.slane %v1104_v51, %v652_v61  ;;  %v1284_v61 = vld [vmem:[%s2208_s3 + $0x2] sm:$0x3] }
 0x2e3   :  { %1698 = vmatpush3.bf16.msra.mxu1 %v1697_v50 }
 0x399   :  { %v1028_v57 = vpop.f32.mrb[2].mxu1  ;;  %v1099_v58 = vpop.f32.mrb[4].mxu0 }
 0x39a   :  { %v1126_v59 = vadd.f32 %v1109_v52, %v1028_v57  ;;  %v1030_v60 = vpop.f32.mrb[3].mxu1  ;;  %v1101_v3 = vpop.f32.mrb[5].mxu0  ;;  %v1128_v5 = vadd.f32 %v1117_v54, %v1099_v58 }
 0x39b   :  { %v1127_v62 = vadd.f32 %v1113_v55, %v1030_v60  ;;  %v1129_v2 = vadd.f32 %v1121_v1, %v1101_v3 }
 0x39c   :  { %v1285_v63 = vmul.f32 -1.442695, %v1126_v59 }
 0x39d   :  { %v1286_v0 = vmul.f32 -1.442695, %v1127_v62  ;;  %v1287_v4 = vmul.f32 -1.442695, %v1129_v2 }
 0x39e   :  { %1740 = vpow2.f32 %v1285_v63 }
 0x39f   :  { %1742 = vpow2.f32 %v1286_v0 }
 0x3a0   :  { %1744 = vpow2.f32 %v1287_v4 }
 0x3a1   :  { %1746 = vtanh.f32 %v1128_v5 }
 0x3a8   :  { %v1741_v56 = vpop.eup %1740 }
 0x3a9   :  { %v1743_v7 = vpop.eup %1742  ;;  %v1133_v9 = vadd.f32 1.0, %v1741_v56 }
 0x3aa   :  { %v1139_v10 = vadd.f32 1.0, %v1743_v7  ;;  %v1745_v11 = vpop.eup %1744 }
 0x3ab   :  { %1748 = vrcp.f32 %v1133_v9  ;;  %v1747_v12 = vpop.eup %1746  ;;  %v1146_v6 = vadd.f32 1.0, %v1745_v11 }
 0x3ac   :  { %1750 = vrcp.f32 %v1139_v10 }
 0x3ad   :  { %1752 = vrcp.f32 %v1146_v6 }
 0x3b5   :  { %v1749_v13 = vpop.eup %1748 }
 0x3b6   :  { %v1751_v14 = vpop.eup %1750  ;;  %v1150_v53 = vmul.f32 %v1749_v13, %v1747_v12 }
 0x3b7   :  { %v1149_v15 = vmul.f32 %v1751_v14, %v1284_v61  ;;  %v1753_v17 = vpop.eup %1752 }
 0x3b9   :  { %v1151_v16 = vadd.f32 %v1150_v53, %v1149_v15 }
 0x3bb   :  { %1289 = vst [vmem:[%s2219_s14 + $0x2] sm:$0x3] %v1151_v16  ;;  %1754 = vtanh.f32 %v1151_v16  ;;  %s1888_s14 = scalar_lea.vmem %s1259_s8, 32 }
 0x3bc   :  { %p1889_p6 = scmp.ne.s32.totalorder %s1259_s8, %s1888_s14  ;;  %p1894_p8 = scmp.lt.s32.totalorder %s1888_s14, %s1888_s14 }
 0x3be   :  { %p1895_p9 = por %p1894_p8, %p1893_p7 }
 0x3c0   :  { %p1896_p10 = pnand %p1895_p9, %p1889_p6 }
 0x3c5   :  { %v1755_v24 = vpop.eup %1754 }
 0x3c6   :  { %v1153_v18 = vmul.f32 %v1755_v24, %v1753_v17 }
 0x3c8   :  { %1288 = vst [vmem:[%s2218_s13 + $0x2] sm:$0x3] %v1153_v18  ;;  %1393 = vmatmul.mubr.f32.vlgmr.msra.gmra.mrb[4].mxu1 %v1153_v18 }
 0x49b   :  { %v1247_v20 = vpop.f32.mrb[4].mxu1 }
 0x49c   :  { %v1248_v21 = vadd.f32 %v1290_v19, %v1247_v20  ;;  %v1394_v22 = vpop.f32.mrb[5].mxu1 }
 0x49e   :  { %1251 = vst [vmem:[#allocation13] sm:$0x3] %v1248_v21 }
 0x49f   :  { %1899 = shalt.err (!%p1896_p10)
}
 0x4a0   :  { %s1900_s24 = scalar_lea.hbm %s2217_s12, 32 }
 0x4a1   :  { %p1901_p11 = scmp.ne.s32.totalorder %s2217_s12, %s1900_s24  ;;  %p1904_p12 = scmp.lt.u32.totalorder %s1900_s24, %s2217_s12 }
 0x4a3   :  { %p1906_p13 = pnand %p1904_p12, %p1901_p11 }
 0x4a5   :  { %1909 = shalt.err (!%p1906_p13)
}
 0x4a6   :  { %1261 = dma.vmem_to_hbm [thread:$0]  %s1259_s8, 32, %s2217_s12, [#allocation4]  }
 0x4a7   :  { %1918 = dma.done.wait [#allocation4], 32  }
 0x4a8   :  { %1919 = vsyncadd [#allocation4], 4294967264 }
 0x4a9   :  { %1273 = vsyncpa [#allocation3], 1 }
 0x4aa   :  { %1274 = vsyncpa [#allocation6], 1 }
 0x4ab   :  { %1275 = vsyncpa [#allocation9], 1 }
 0x4ac   :  { %1276 = vsyncpa [#allocation12], 1 }
 0x4ad   :  { %1277 = vsyncpa [#allocation4], 1 }

</bundles_post_ra>
